<compile_context>
chip_gen: v7x
topology: tpu7x:2x2x1
jax: 0.10.0
libtpu: 0.0.40
codegen_flags: <defaults>
</compile_context>

<pallas_src>
import math

import jax
import jax.numpy as jnp
from jax import lax
from jax.experimental import pallas as pl
from jax.experimental.pallas import tpu as pltpu

NUM_HEADS = 4
HIDN = 32
HEAD_DIM = HIDN // NUM_HEADS
EPS = 1e-5                      # nn.LayerNorm default
SLAB_ROWS = 3 * HIDN + 8        # Wqk rows | Wvo rows | W1 rows | 8 bias rows
SLAB_LANES = 128


def cascaded_encoder_kernel(x_ref, wslab_ref, w2_ref, y_ref):
    """One grid step = the WHOLE layer stack applied to one batch element."""
    D, H, HD = HIDN, NUM_HEADS, HEAD_DIM
    L = wslab_ref.shape[0]
    x0 = x_ref[0]                                 # (S, D) residual stream
    S = x0.shape[0]

    def layer_step(l, x):
        wl = wslab_ref[l]                         # (3D+8, 128) VMEM-resident slab
        w2 = w2_ref[l]                            # (4D, D)
        wqk = wl[0:D, 0:2 * D]                    # (D, 2D)  LN1 affine + 1/sqrt(HD) folded in
        wvo = wl[D:2 * D, 0:H * D]                # (D, H*D) diag(g1) Wv_h Wo_h, heads along lanes
        w1 = wl[2 * D:3 * D, 0:4 * D]             # (D, 4D)  LN2 affine folded in
        vec = wl[3 * D:3 * D + 8, :]              # (8, 128) packed biases
        bqk = vec[0:1, 0:2 * D]
        bo = vec[1:2, 0:D]
        b1 = vec[2:3, 0:4 * D]
        b2 = vec[3:4, 0:D]

        # ---------------- pre-LN multi-head self-attention ----------------
        mu = jnp.mean(x, axis=-1, keepdims=True)
        var = jnp.mean((x - mu) ** 2, axis=-1, keepdims=True)
        xn = (x - mu) * lax.rsqrt(var + EPS)      # affine is folded into the weights

        qk = jnp.dot(xn, wqk, preferred_element_type=jnp.float32) + bqk     # (S, 2D)
        vproj = jnp.dot(xn, wvo, preferred_element_type=jnp.float32)        # (S, H*D)

        attn = jnp.zeros((S, D), jnp.float32)
        for h in range(H):                        # static unroll; lane slices only
            q_h = qk[:, h * HD:(h + 1) * HD]                                # (S, HD)
            k_h = qk[:, D + h * HD:D + (h + 1) * HD]                        # (S, HD)
            s = lax.dot_general(q_h, k_h, (((1,), (1,)), ((), ())),
                                preferred_element_type=jnp.float32)         # (S, S)
            s = s - jnp.max(s, axis=-1, keepdims=True)                      # stable softmax
            p = jnp.exp(s)
            p = p * pl.reciprocal(jnp.sum(p, axis=-1, keepdims=True), approx=True)
            attn = attn + jnp.dot(p, vproj[:, h * D:(h + 1) * D],
                                  preferred_element_type=jnp.float32)       # (S, D)
        x = x + attn + bo

        # ---------------- pre-LN feed-forward ----------------
        mu2 = jnp.mean(x, axis=-1, keepdims=True)
        var2 = jnp.mean((x - mu2) ** 2, axis=-1, keepdims=True)
        xn2 = (x - mu2) * lax.rsqrt(var2 + EPS)
        f = jnp.dot(xn2, w1, preferred_element_type=jnp.float32) + b1       # (S, 4D)
        f = 0.5 * f * (1.0 + lax.erf(f * (1.0 / math.sqrt(2.0))))           # exact GELU
        f = jnp.dot(f, w2, preferred_element_type=jnp.float32) + b2         # (S, D)
        # TODO(synk): nn.Dropout(p=0.01) is identity in eval mode; PRNG path not implemented.
        return x + f

    y_ref[0] = lax.fori_loop(0, L, layer_step, x0, unroll=True)


def cascaded_encoder_forward(x, packed):
    B, S, D = x.shape
    L, R, _ = packed["wslab"].shape
    return pl.pallas_call(
        cascaded_encoder_kernel,
        out_shape=jax.ShapeDtypeStruct((B, S, D), jnp.float32),
        grid_spec=pltpu.PrefetchScalarGridSpec(
            num_scalar_prefetch=0,
            grid=(B,),                                         # batch only; layers loop in-kernel
            in_specs=[
                pl.BlockSpec((1, S, D), lambda b: (b, 0, 0)),
                pl.BlockSpec((L, R, SLAB_LANES), lambda b: (0, 0, 0)),   # DMA'd once, resident
                pl.BlockSpec((L, 4 * D, D), lambda b: (0, 0, 0)),        # DMA'd once, resident
            ],
            out_specs=pl.BlockSpec((1, S, D), lambda b: (b, 0, 0)),
        ),
        compiler_params=pltpu.CompilerParams(
            dimension_semantics=("parallel",)),
    )(x, packed["wslab"], packed["w2"])


# ------------------------- host-side parameter packing -------------------------

def init_layer_params(key, hidn):
    ks = jax.random.split(key, 16)
    s = 0.02
    return {
        "ln1_w": 1.0 + 0.1 * jax.random.normal(ks[0], (hidn,), jnp.float32),
        "ln1_b": 0.1 * jax.random.normal(ks[1], (hidn,), jnp.float32),
        "ln2_w": 1.0 + 0.1 * jax.random.normal(ks[2], (hidn,), jnp.float32),
        "ln2_b": 0.1 * jax.random.normal(ks[3], (hidn,), jnp.float32),
        "wq": s * jax.random.normal(ks[4], (hidn, hidn), jnp.float32),
        "wk": s * jax.random.normal(ks[5], (hidn, hidn), jnp.float32),
        "wv": s * jax.random.normal(ks[6], (hidn, hidn), jnp.float32),
        "wo": s * jax.random.normal(ks[7], (hidn, hidn), jnp.float32),
        "bq": s * jax.random.normal(ks[8], (hidn,), jnp.float32),
        "bk": s * jax.random.normal(ks[9], (hidn,), jnp.float32),
        "bv": s * jax.random.normal(ks[10], (hidn,), jnp.float32),
        "bo": s * jax.random.normal(ks[11], (hidn,), jnp.float32),
        "w1": s * jax.random.normal(ks[12], (hidn, 4 * hidn), jnp.float32),
        "b1": s * jax.random.normal(ks[13], (4 * hidn,), jnp.float32),
        "w2": s * jax.random.normal(ks[14], (4 * hidn, hidn), jnp.float32),
        "b2": s * jax.random.normal(ks[15], (hidn,), jnp.float32),
    }


def pack_params(layers, hidn):
    """Fold LN affines / attention scale / Wv@Wo into two lane-dense slabs per layer."""
    D, H, HD = hidn, NUM_HEADS, HEAD_DIM
    assert 2 * D <= 128 and 4 * D <= 128 and H * D <= 128, "slab packing assumes hidn <= 32"
    scale = 1.0 / math.sqrt(HD)
    wslabs, w2s = [], []
    for p in layers:
        g1, be1 = p["ln1_w"], p["ln1_b"]
        g2, be2 = p["ln2_w"], p["ln2_b"]
        # LN1 affine + softmax scale folded into Q/K projection:
        #   (g*xn + b) @ W = xn @ (diag(g) W) + b @ W
        wq = (g1[:, None] * p["wq"]) * scale
        bq = (be1 @ p["wq"] + p["bq"]) * scale
        wk = g1[:, None] * p["wk"]
        bk = be1 @ p["wk"] + p["bk"]
        wqk = jnp.concatenate([wq, wk], axis=1)                       # (D, 2D)
        bqk = jnp.concatenate([bq, bk])                               # (2D,)
        # Value path: fold diag(g1) Wv_h Wo_h into one (D, D) matrix per head;
        # the constant (be1@Wv + bv)@Wo term passes through softmax unchanged -> into bo.
        wv = g1[:, None] * p["wv"]
        wvo = jnp.concatenate(
            [wv[:, h * HD:(h + 1) * HD] @ p["wo"][h * HD:(h + 1) * HD, :]
             for h in range(H)], axis=1)                              # (D, H*D)
        bo = p["bo"] + (be1 @ p["wv"] + p["bv"]) @ p["wo"]            # (D,)
        # LN2 affine folded into the first MLP matmul.
        w1 = g2[:, None] * p["w1"]                                    # (D, 4D)
        b1 = be2 @ p["w1"] + p["b1"]                                  # (4D,)

        vec = jnp.zeros((8, SLAB_LANES), jnp.float32)
        vec = vec.at[0, :2 * D].set(bqk)
        vec = vec.at[1, :D].set(bo)
        vec = vec.at[2, :4 * D].set(b1)
        vec = vec.at[3, :D].set(p["b2"])

        slab = jnp.zeros((SLAB_ROWS, SLAB_LANES), jnp.float32)
        slab = slab.at[0:D, :2 * D].set(wqk)
        slab = slab.at[D:2 * D, :H * D].set(wvo)
        slab = slab.at[2 * D:3 * D, :4 * D].set(w1)
        slab = slab.at[3 * D:3 * D + 8, :].set(vec)
        wslabs.append(slab)
        w2s.append(p["w2"])
    return {"wslab": jnp.stack(wslabs), "w2": jnp.stack(w2s)}


# ------------------------------ pure-JAX reference ------------------------------

def encoder_layer_reference(x, p):
    def ln(t, w, b):
        mu = t.mean(-1, keepdims=True)
        var = ((t - mu) ** 2).mean(-1, keepdims=True)
        return (t - mu) / jnp.sqrt(var + EPS) * w + b

    B, S, D = x.shape
    h = ln(x, p["ln1_w"], p["ln1_b"])
    q = h @ p["wq"] + p["bq"]
    k = h @ p["wk"] + p["bk"]
    v = h @ p["wv"] + p["bv"]
    q = q.reshape(B, S, NUM_HEADS, HEAD_DIM).transpose(0, 2, 1, 3)
    k = k.reshape(B, S, NUM_HEADS, HEAD_DIM).transpose(0, 2, 1, 3)
    v = v.reshape(B, S, NUM_HEADS, HEAD_DIM).transpose(0, 2, 1, 3)
    s = jnp.einsum("bhqd,bhkd->bhqk", q, k) / math.sqrt(HEAD_DIM)
    a = jax.nn.softmax(s, axis=-1)
    o = jnp.einsum("bhqk,bhkd->bhqd", a, v).transpose(0, 2, 1, 3).reshape(B, S, D)
    x = x + o @ p["wo"] + p["bo"]
    h2 = ln(x, p["ln2_w"], p["ln2_b"])
    f = h2 @ p["w1"] + p["b1"]
    f = 0.5 * f * (1.0 + lax.erf(f / math.sqrt(2.0)))
    f = f @ p["w2"] + p["b2"]
    return x + f


def cascaded_reference(x, layers):
    for p in layers:
        x = encoder_layer_reference(x, p)
    return x


if __name__ == "__main__":
    key = jax.random.PRNGKey(0)
    k_x, k_p = jax.random.split(key)

    B, S, D, L = 2, 8, HIDN, 3    # batch=2, seq=8, hidden=32, heads=4, num_casd=3
    x = jax.random.normal(k_x, (B, S, D), jnp.float32)
    layer_keys = jax.random.split(k_p, L)
    layers = [init_layer_params(k, D) for k in layer_keys]
    packed = pack_params(layers, D)

    y = cascaded_encoder_forward(x, packed)
    y = jax.block_until_ready(y)

    y_ref = cascaded_reference(x, layers)
    assert y.shape == (B, S, D)
    assert jnp.allclose(y, y_ref, atol=1e-3, rtol=1e-3), "mismatch vs JAX reference"

    print("KERNEL_OK")
</pallas_src>

<mosaic_0001>
module attributes {stable_mosaic.version = 11 : i64} {
  func.func @cascaded_encoder_kernel(%arg0: i32, %arg1: memref<1x8x32xf32, #tpu.memory_space<vmem>>, %arg2: memref<3x104x128xf32, #tpu.memory_space<vmem>>, %arg3: memref<3x128x32xf32, #tpu.memory_space<vmem>>, %arg4: memref<1x8x32xf32, #tpu.memory_space<vmem>>) attributes {dimension_semantics = [#tpu.dimension_semantics<parallel>], iteration_bounds = array<i64: 2>, scalar_prefetch = 0 : i64, scratch_operands = 0 : i64, tpu.core_type = #tpu.core_type<tc>, window_params = [{transform_indices = @transform_0, window_bounds = array<i64: 1, 8, 32>}, {pipeline_mode = #tpu.pipeline_mode<synchronous>, transform_indices = @transform_1, window_bounds = array<i64: 3, 104, 128>}, {pipeline_mode = #tpu.pipeline_mode<synchronous>, transform_indices = @transform_2, window_bounds = array<i64: 3, 128, 32>}, {transform_indices = @transform_3, window_bounds = array<i64: 1, 8, 32>}]} {
    %c0 = arith.constant 0 : index
    %c0_0 = arith.constant 0 : index
    %c0_1 = arith.constant 0 : index
    %0 = vector.load %arg1[%c0, %c0_0, %c0_1] : memref<1x8x32xf32, #tpu.memory_space<vmem>>, vector<1x8x32xf32>
    %1 = vector.shape_cast %0 : vector<1x8x32xf32> to vector<8x32xf32>
    %c0_i32 = arith.constant 0 : i32
    %2 = arith.index_cast %c0_i32 : i32 to index
    %c0_2 = arith.constant 0 : index
    %c0_3 = arith.constant 0 : index
    %3 = vector.load %arg2[%2, %c0_2, %c0_3] : memref<3x104x128xf32, #tpu.memory_space<vmem>>, vector<1x104x128xf32>
    %4 = vector.shape_cast %3 : vector<1x104x128xf32> to vector<104x128xf32>
    %5 = arith.index_cast %c0_i32 : i32 to index
    %c0_4 = arith.constant 0 : index
    %c0_5 = arith.constant 0 : index
    %6 = vector.load %arg3[%5, %c0_4, %c0_5] : memref<3x128x32xf32, #tpu.memory_space<vmem>>, vector<1x128x32xf32>
    %7 = vector.shape_cast %6 : vector<1x128x32xf32> to vector<128x32xf32>
    %8 = vector.extract_strided_slice %4 {offsets = [0, 0], sizes = [32, 64], strides = [1, 1]} : vector<104x128xf32> to vector<32x64xf32>
    %9 = vector.extract_strided_slice %4 {offsets = [32, 0], sizes = [32, 128], strides = [1, 1]} : vector<104x128xf32> to vector<32x128xf32>
    %10 = vector.extract_strided_slice %4 {offsets = [64, 0], sizes = [32, 128], strides = [1, 1]} : vector<104x128xf32> to vector<32x128xf32>
    %11 = vector.extract_strided_slice %4 {offsets = [96, 0], sizes = [8, 128], strides = [1, 1]} : vector<104x128xf32> to vector<8x128xf32>
    %12 = vector.extract_strided_slice %11 {offsets = [0, 0], sizes = [1, 64], strides = [1, 1]} : vector<8x128xf32> to vector<1x64xf32>
    %13 = vector.extract_strided_slice %11 {offsets = [1, 0], sizes = [1, 32], strides = [1, 1]} : vector<8x128xf32> to vector<1x32xf32>
    %14 = vector.extract_strided_slice %11 {offsets = [2, 0], sizes = [1, 128], strides = [1, 1]} : vector<8x128xf32> to vector<1x128xf32>
    %15 = vector.extract_strided_slice %11 {offsets = [3, 0], sizes = [1, 32], strides = [1, 1]} : vector<8x128xf32> to vector<1x32xf32>
    %cst = arith.constant dense<0.000000e+00> : vector<8xf32>
    %16 = vector.multi_reduction <add>, %1, %cst [1] : vector<8x32xf32> to vector<8xf32>
    %17 = vector.shape_cast %16 : vector<8xf32> to vector<8x1xf32>
    %cst_6 = arith.constant 3.200000e+01 : f32
    %18 = vector.broadcast %cst_6 : f32 to vector<8x1xf32>
    %19 = arith.divf %17, %18 : vector<8x1xf32>
    %20 = vector.broadcast %19 : vector<8x1xf32> to vector<8x32xf32>
    %21 = arith.subf %1, %20 : vector<8x32xf32>
    %22 = arith.mulf %21, %21 : vector<8x32xf32>
    %cst_7 = arith.constant dense<0.000000e+00> : vector<8xf32>
    %23 = vector.multi_reduction <add>, %22, %cst_7 [1] : vector<8x32xf32> to vector<8xf32>
    %24 = vector.shape_cast %23 : vector<8xf32> to vector<8x1xf32>
    %cst_8 = arith.constant 3.200000e+01 : f32
    %25 = vector.broadcast %cst_8 : f32 to vector<8x1xf32>
    %26 = arith.divf %24, %25 : vector<8x1xf32>
    %27 = vector.broadcast %19 : vector<8x1xf32> to vector<8x32xf32>
    %28 = arith.subf %1, %27 : vector<8x32xf32>
    %cst_9 = arith.constant 9.99999974E-6 : f32
    %29 = vector.broadcast %cst_9 : f32 to vector<8x1xf32>
    %30 = arith.addf %26, %29 : vector<8x1xf32>
    %31 = math.rsqrt %30 : vector<8x1xf32>
    %32 = vector.broadcast %31 : vector<8x1xf32> to vector<8x32xf32>
    %33 = arith.mulf %28, %32 : vector<8x32xf32>
    %cst_10 = arith.constant dense<0.000000e+00> : vector<8x64xf32>
    %34 = tpu.matmul %33, %8, %cst_10 {dimension_numbers = #tpu.dot_dimension_numbers<[1], [0], [0], [1], [0, 0, 1, 1], [], []>} : vector<8x32xf32>, vector<32x64xf32>, vector<8x64xf32> -> vector<8x64xf32>
    %35 = vector.broadcast %12 : vector<1x64xf32> to vector<8x64xf32>
    %36 = arith.addf %34, %35 : vector<8x64xf32>
    %cst_11 = arith.constant dense<0.000000e+00> : vector<8x128xf32>
    %37 = tpu.matmul %33, %9, %cst_11 {dimension_numbers = #tpu.dot_dimension_numbers<[1], [0], [0], [1], [0, 0, 1, 1], [], []>} : vector<8x32xf32>, vector<32x128xf32>, vector<8x128xf32> -> vector<8x128xf32>
    %cst_12 = arith.constant 0.000000e+00 : f32
    %38 = vector.broadcast %cst_12 : f32 to vector<8x32xf32>
    %39 = vector.extract_strided_slice %36 {offsets = [0, 0], sizes = [8, 8], strides = [1, 1]} : vector<8x64xf32> to vector<8x8xf32>
    %40 = vector.extract_strided_slice %36 {offsets = [0, 32], sizes = [8, 8], strides = [1, 1]} : vector<8x64xf32> to vector<8x8xf32>
    %cst_13 = arith.constant dense<0.000000e+00> : vector<8x8xf32>
    %41 = tpu.matmul %39, %40, %cst_13 {dimension_numbers = #tpu.dot_dimension_numbers<[1], [1], [0], [0], [0, 0, 1, 0], [], []>} : vector<8x8xf32>, vector<8x8xf32>, vector<8x8xf32> -> vector<8x8xf32>
    %cst_14 = arith.constant dense<0xFF800000> : vector<8xf32>
    %42 = vector.multi_reduction <maximumf>, %41, %cst_14 [1] : vector<8x8xf32> to vector<8xf32>
    %43 = vector.shape_cast %42 : vector<8xf32> to vector<8x1xf32>
    %44 = vector.broadcast %43 : vector<8x1xf32> to vector<8x8xf32>
    %45 = arith.subf %41, %44 : vector<8x8xf32>
    %46 = math.exp %45 : vector<8x8xf32>
    %cst_15 = arith.constant dense<0.000000e+00> : vector<8xf32>
    %47 = vector.multi_reduction <add>, %46, %cst_15 [1] : vector<8x8xf32> to vector<8xf32>
    %48 = vector.shape_cast %47 : vector<8xf32> to vector<8x1xf32>
    %49 = tpu.reciprocal %48 {approx = true} : vector<8x1xf32> -> vector<8x1xf32>
    %50 = vector.broadcast %49 : vector<8x1xf32> to vector<8x8xf32>
    %51 = arith.mulf %46, %50 : vector<8x8xf32>
    %52 = vector.extract_strided_slice %37 {offsets = [0, 0], sizes = [8, 32], strides = [1, 1]} : vector<8x128xf32> to vector<8x32xf32>
    %cst_16 = arith.constant dense<0.000000e+00> : vector<8x32xf32>
    %53 = tpu.matmul %51, %52, %cst_16 {dimension_numbers = #tpu.dot_dimension_numbers<[1], [0], [0], [1], [0, 0, 1, 1], [], []>} : vector<8x8xf32>, vector<8x32xf32>, vector<8x32xf32> -> vector<8x32xf32>
    %54 = arith.addf %38, %53 : vector<8x32xf32>
    %55 = vector.extract_strided_slice %36 {offsets = [0, 8], sizes = [8, 8], strides = [1, 1]} : vector<8x64xf32> to vector<8x8xf32>
    %56 = vector.extract_strided_slice %36 {offsets = [0, 40], sizes = [8, 8], strides = [1, 1]} : vector<8x64xf32> to vector<8x8xf32>
    %cst_17 = arith.constant dense<0.000000e+00> : vector<8x8xf32>
    %57 = tpu.matmul %55, %56, %cst_17 {dimension_numbers = #tpu.dot_dimension_numbers<[1], [1], [0], [0], [0, 0, 1, 0], [], []>} : vector<8x8xf32>, vector<8x8xf32>, vector<8x8xf32> -> vector<8x8xf32>
    %cst_18 = arith.constant dense<0xFF800000> : vector<8xf32>
    %58 = vector.multi_reduction <maximumf>, %57, %cst_18 [1] : vector<8x8xf32> to vector<8xf32>
    %59 = vector.shape_cast %58 : vector<8xf32> to vector<8x1xf32>
    %60 = vector.broadcast %59 : vector<8x1xf32> to vector<8x8xf32>
    %61 = arith.subf %57, %60 : vector<8x8xf32>
    %62 = math.exp %61 : vector<8x8xf32>
    %cst_19 = arith.constant dense<0.000000e+00> : vector<8xf32>
    %63 = vector.multi_reduction <add>, %62, %cst_19 [1] : vector<8x8xf32> to vector<8xf32>
    %64 = vector.shape_cast %63 : vector<8xf32> to vector<8x1xf32>
    %65 = tpu.reciprocal %64 {approx = true} : vector<8x1xf32> -> vector<8x1xf32>
    %66 = vector.broadcast %65 : vector<8x1xf32> to vector<8x8xf32>
    %67 = arith.mulf %62, %66 : vector<8x8xf32>
    %68 = vector.extract_strided_slice %37 {offsets = [0, 32], sizes = [8, 32], strides = [1, 1]} : vector<8x128xf32> to vector<8x32xf32>
    %cst_20 = arith.constant dense<0.000000e+00> : vector<8x32xf32>
    %69 = tpu.matmul %67, %68, %cst_20 {dimension_numbers = #tpu.dot_dimension_numbers<[1], [0], [0], [1], [0, 0, 1, 1], [], []>} : vector<8x8xf32>, vector<8x32xf32>, vector<8x32xf32> -> vector<8x32xf32>
    %70 = arith.addf %54, %69 : vector<8x32xf32>
    %71 = vector.extract_strided_slice %36 {offsets = [0, 16], sizes = [8, 8], strides = [1, 1]} : vector<8x64xf32> to vector<8x8xf32>
    %72 = vector.extract_strided_slice %36 {offsets = [0, 48], sizes = [8, 8], strides = [1, 1]} : vector<8x64xf32> to vector<8x8xf32>
    %cst_21 = arith.constant dense<0.000000e+00> : vector<8x8xf32>
    %73 = tpu.matmul %71, %72, %cst_21 {dimension_numbers = #tpu.dot_dimension_numbers<[1], [1], [0], [0], [0, 0, 1, 0], [], []>} : vector<8x8xf32>, vector<8x8xf32>, vector<8x8xf32> -> vector<8x8xf32>
    %cst_22 = arith.constant dense<0xFF800000> : vector<8xf32>
    %74 = vector.multi_reduction <maximumf>, %73, %cst_22 [1] : vector<8x8xf32> to vector<8xf32>
    %75 = vector.shape_cast %74 : vector<8xf32> to vector<8x1xf32>
    %76 = vector.broadcast %75 : vector<8x1xf32> to vector<8x8xf32>
    %77 = arith.subf %73, %76 : vector<8x8xf32>
    %78 = math.exp %77 : vector<8x8xf32>
    %cst_23 = arith.constant dense<0.000000e+00> : vector<8xf32>
    %79 = vector.multi_reduction <add>, %78, %cst_23 [1] : vector<8x8xf32> to vector<8xf32>
    %80 = vector.shape_cast %79 : vector<8xf32> to vector<8x1xf32>
    %81 = tpu.reciprocal %80 {approx = true} : vector<8x1xf32> -> vector<8x1xf32>
    %82 = vector.broadcast %81 : vector<8x1xf32> to vector<8x8xf32>
    %83 = arith.mulf %78, %82 : vector<8x8xf32>
    %84 = vector.extract_strided_slice %37 {offsets = [0, 64], sizes = [8, 32], strides = [1, 1]} : vector<8x128xf32> to vector<8x32xf32>
    %cst_24 = arith.constant dense<0.000000e+00> : vector<8x32xf32>
    %85 = tpu.matmul %83, %84, %cst_24 {dimension_numbers = #tpu.dot_dimension_numbers<[1], [0], [0], [1], [0, 0, 1, 1], [], []>} : vector<8x8xf32>, vector<8x32xf32>, vector<8x32xf32> -> vector<8x32xf32>
    %86 = arith.addf %70, %85 : vector<8x32xf32>
    %87 = vector.extract_strided_slice %36 {offsets = [0, 24], sizes = [8, 8], strides = [1, 1]} : vector<8x64xf32> to vector<8x8xf32>
    %88 = vector.extract_strided_slice %36 {offsets = [0, 56], sizes = [8, 8], strides = [1, 1]} : vector<8x64xf32> to vector<8x8xf32>
    %cst_25 = arith.constant dense<0.000000e+00> : vector<8x8xf32>
    %89 = tpu.matmul %87, %88, %cst_25 {dimension_numbers = #tpu.dot_dimension_numbers<[1], [1], [0], [0], [0, 0, 1, 0], [], []>} : vector<8x8xf32>, vector<8x8xf32>, vector<8x8xf32> -> vector<8x8xf32>
    %cst_26 = arith.constant dense<0xFF800000> : vector<8xf32>
    %90 = vector.multi_reduction <maximumf>, %89, %cst_26 [1] : vector<8x8xf32> to vector<8xf32>
    %91 = vector.shape_cast %90 : vector<8xf32> to vector<8x1xf32>
    %92 = vector.broadcast %91 : vector<8x1xf32> to vector<8x8xf32>
    %93 = arith.subf %89, %92 : vector<8x8xf32>
    %94 = math.exp %93 : vector<8x8xf32>
    %cst_27 = arith.constant dense<0.000000e+00> : vector<8xf32>
    %95 = vector.multi_reduction <add>, %94, %cst_27 [1] : vector<8x8xf32> to vector<8xf32>
    %96 = vector.shape_cast %95 : vector<8xf32> to vector<8x1xf32>
    %97 = tpu.reciprocal %96 {approx = true} : vector<8x1xf32> -> vector<8x1xf32>
    %98 = vector.broadcast %97 : vector<8x1xf32> to vector<8x8xf32>
    %99 = arith.mulf %94, %98 : vector<8x8xf32>
    %100 = vector.extract_strided_slice %37 {offsets = [0, 96], sizes = [8, 32], strides = [1, 1]} : vector<8x128xf32> to vector<8x32xf32>
    %cst_28 = arith.constant dense<0.000000e+00> : vector<8x32xf32>
    %101 = tpu.matmul %99, %100, %cst_28 {dimension_numbers = #tpu.dot_dimension_numbers<[1], [0], [0], [1], [0, 0, 1, 1], [], []>} : vector<8x8xf32>, vector<8x32xf32>, vector<8x32xf32> -> vector<8x32xf32>
    %102 = arith.addf %86, %101 : vector<8x32xf32>
    %103 = arith.addf %1, %102 : vector<8x32xf32>
    %104 = vector.broadcast %13 : vector<1x32xf32> to vector<8x32xf32>
    %105 = arith.addf %103, %104 : vector<8x32xf32>
    %cst_29 = arith.constant dense<0.000000e+00> : vector<8xf32>
    %106 = vector.multi_reduction <add>, %105, %cst_29 [1] : vector<8x32xf32> to vector<8xf32>
    %107 = vector.shape_cast %106 : vector<8xf32> to vector<8x1xf32>
    %cst_30 = arith.constant 3.200000e+01 : f32
    %108 = vector.broadcast %cst_30 : f32 to vector<8x1xf32>
    %109 = arith.divf %107, %108 : vector<8x1xf32>
    %110 = vector.broadcast %109 : vector<8x1xf32> to vector<8x32xf32>
    %111 = arith.subf %105, %110 : vector<8x32xf32>
    %112 = arith.mulf %111, %111 : vector<8x32xf32>
    %cst_31 = arith.constant dense<0.000000e+00> : vector<8xf32>
    %113 = vector.multi_reduction <add>, %112, %cst_31 [1] : vector<8x32xf32> to vector<8xf32>
    %114 = vector.shape_cast %113 : vector<8xf32> to vector<8x1xf32>
    %cst_32 = arith.constant 3.200000e+01 : f32
    %115 = vector.broadcast %cst_32 : f32 to vector<8x1xf32>
    %116 = arith.divf %114, %115 : vector<8x1xf32>
    %117 = vector.broadcast %109 : vector<8x1xf32> to vector<8x32xf32>
    %118 = arith.subf %105, %117 : vector<8x32xf32>
    %cst_33 = arith.constant 9.99999974E-6 : f32
    %119 = vector.broadcast %cst_33 : f32 to vector<8x1xf32>
    %120 = arith.addf %116, %119 : vector<8x1xf32>
    %121 = math.rsqrt %120 : vector<8x1xf32>
    %122 = vector.broadcast %121 : vector<8x1xf32> to vector<8x32xf32>
    %123 = arith.mulf %118, %122 : vector<8x32xf32>
    %cst_34 = arith.constant dense<0.000000e+00> : vector<8x128xf32>
    %124 = tpu.matmul %123, %10, %cst_34 {dimension_numbers = #tpu.dot_dimension_numbers<[1], [0], [0], [1], [0, 0, 1, 1], [], []>} : vector<8x32xf32>, vector<32x128xf32>, vector<8x128xf32> -> vector<8x128xf32>
    %125 = vector.broadcast %14 : vector<1x128xf32> to vector<8x128xf32>
    %126 = arith.addf %124, %125 : vector<8x128xf32>
    %cst_35 = arith.constant 5.000000e-01 : f32
    %127 = vector.broadcast %cst_35 : f32 to vector<8x128xf32>
    %128 = arith.mulf %127, %126 : vector<8x128xf32>
    %cst_36 = arith.constant 0.707106769 : f32
    %129 = vector.broadcast %cst_36 : f32 to vector<8x128xf32>
    %130 = arith.mulf %126, %129 : vector<8x128xf32>
    %131 = math.erf %130 : vector<8x128xf32>
    %cst_37 = arith.constant 1.000000e+00 : f32
    %132 = vector.broadcast %cst_37 : f32 to vector<8x128xf32>
    %133 = arith.addf %132, %131 : vector<8x128xf32>
    %134 = arith.mulf %128, %133 : vector<8x128xf32>
    %cst_38 = arith.constant dense<0.000000e+00> : vector<8x32xf32>
    %135 = tpu.matmul %134, %7, %cst_38 {dimension_numbers = #tpu.dot_dimension_numbers<[1], [0], [0], [1], [0, 0, 1, 1], [], []>} : vector<8x128xf32>, vector<128x32xf32>, vector<8x32xf32> -> vector<8x32xf32>
    %136 = vector.broadcast %15 : vector<1x32xf32> to vector<8x32xf32>
    %137 = arith.addf %135, %136 : vector<8x32xf32>
    %138 = arith.addf %105, %137 : vector<8x32xf32>
    %c1_i32 = arith.constant 1 : i32
    %139 = arith.index_cast %c1_i32 : i32 to index
    %c0_39 = arith.constant 0 : index
    %c0_40 = arith.constant 0 : index
    %140 = vector.load %arg2[%139, %c0_39, %c0_40] : memref<3x104x128xf32, #tpu.memory_space<vmem>>, vector<1x104x128xf32>
    %141 = vector.shape_cast %140 : vector<1x104x128xf32> to vector<104x128xf32>
    %142 = arith.index_cast %c1_i32 : i32 to index
    %c0_41 = arith.constant 0 : index
    %c0_42 = arith.constant 0 : index
    %143 = vector.load %arg3[%142, %c0_41, %c0_42] : memref<3x128x32xf32, #tpu.memory_space<vmem>>, vector<1x128x32xf32>
    %144 = vector.shape_cast %143 : vector<1x128x32xf32> to vector<128x32xf32>
    %145 = vector.extract_strided_slice %141 {offsets = [0, 0], sizes = [32, 64], strides = [1, 1]} : vector<104x128xf32> to vector<32x64xf32>
    %146 = vector.extract_strided_slice %141 {offsets = [32, 0], sizes = [32, 128], strides = [1, 1]} : vector<104x128xf32> to vector<32x128xf32>
    %147 = vector.extract_strided_slice %141 {offsets = [64, 0], sizes = [32, 128], strides = [1, 1]} : vector<104x128xf32> to vector<32x128xf32>
    %148 = vector.extract_strided_slice %141 {offsets = [96, 0], sizes = [8, 128], strides = [1, 1]} : vector<104x128xf32> to vector<8x128xf32>
    %149 = vector.extract_strided_slice %148 {offsets = [0, 0], sizes = [1, 64], strides = [1, 1]} : vector<8x128xf32> to vector<1x64xf32>
    %150 = vector.extract_strided_slice %148 {offsets = [1, 0], sizes = [1, 32], strides = [1, 1]} : vector<8x128xf32> to vector<1x32xf32>
    %151 = vector.extract_strided_slice %148 {offsets = [2, 0], sizes = [1, 128], strides = [1, 1]} : vector<8x128xf32> to vector<1x128xf32>
    %152 = vector.extract_strided_slice %148 {offsets = [3, 0], sizes = [1, 32], strides = [1, 1]} : vector<8x128xf32> to vector<1x32xf32>
    %cst_43 = arith.constant dense<0.000000e+00> : vector<8xf32>
    %153 = vector.multi_reduction <add>, %138, %cst_43 [1] : vector<8x32xf32> to vector<8xf32>
    %154 = vector.shape_cast %153 : vector<8xf32> to vector<8x1xf32>
    %cst_44 = arith.constant 3.200000e+01 : f32
    %155 = vector.broadcast %cst_44 : f32 to vector<8x1xf32>
    %156 = arith.divf %154, %155 : vector<8x1xf32>
    %157 = vector.broadcast %156 : vector<8x1xf32> to vector<8x32xf32>
    %158 = arith.subf %138, %157 : vector<8x32xf32>
    %159 = arith.mulf %158, %158 : vector<8x32xf32>
    %cst_45 = arith.constant dense<0.000000e+00> : vector<8xf32>
    %160 = vector.multi_reduction <add>, %159, %cst_45 [1] : vector<8x32xf32> to vector<8xf32>
    %161 = vector.shape_cast %160 : vector<8xf32> to vector<8x1xf32>
    %cst_46 = arith.constant 3.200000e+01 : f32
    %162 = vector.broadcast %cst_46 : f32 to vector<8x1xf32>
    %163 = arith.divf %161, %162 : vector<8x1xf32>
    %164 = vector.broadcast %156 : vector<8x1xf32> to vector<8x32xf32>
    %165 = arith.subf %138, %164 : vector<8x32xf32>
    %cst_47 = arith.constant 9.99999974E-6 : f32
    %166 = vector.broadcast %cst_47 : f32 to vector<8x1xf32>
    %167 = arith.addf %163, %166 : vector<8x1xf32>
    %168 = math.rsqrt %167 : vector<8x1xf32>
    %169 = vector.broadcast %168 : vector<8x1xf32> to vector<8x32xf32>
    %170 = arith.mulf %165, %169 : vector<8x32xf32>
    %cst_48 = arith.constant dense<0.000000e+00> : vector<8x64xf32>
    %171 = tpu.matmul %170, %145, %cst_48 {dimension_numbers = #tpu.dot_dimension_numbers<[1], [0], [0], [1], [0, 0, 1, 1], [], []>} : vector<8x32xf32>, vector<32x64xf32>, vector<8x64xf32> -> vector<8x64xf32>
    %172 = vector.broadcast %149 : vector<1x64xf32> to vector<8x64xf32>
    %173 = arith.addf %171, %172 : vector<8x64xf32>
    %cst_49 = arith.constant dense<0.000000e+00> : vector<8x128xf32>
    %174 = tpu.matmul %170, %146, %cst_49 {dimension_numbers = #tpu.dot_dimension_numbers<[1], [0], [0], [1], [0, 0, 1, 1], [], []>} : vector<8x32xf32>, vector<32x128xf32>, vector<8x128xf32> -> vector<8x128xf32>
    %cst_50 = arith.constant 0.000000e+00 : f32
    %175 = vector.broadcast %cst_50 : f32 to vector<8x32xf32>
    %176 = vector.extract_strided_slice %173 {offsets = [0, 0], sizes = [8, 8], strides = [1, 1]} : vector<8x64xf32> to vector<8x8xf32>
    %177 = vector.extract_strided_slice %173 {offsets = [0, 32], sizes = [8, 8], strides = [1, 1]} : vector<8x64xf32> to vector<8x8xf32>
    %cst_51 = arith.constant dense<0.000000e+00> : vector<8x8xf32>
    %178 = tpu.matmul %176, %177, %cst_51 {dimension_numbers = #tpu.dot_dimension_numbers<[1], [1], [0], [0], [0, 0, 1, 0], [], []>} : vector<8x8xf32>, vector<8x8xf32>, vector<8x8xf32> -> vector<8x8xf32>
    %cst_52 = arith.constant dense<0xFF800000> : vector<8xf32>
    %179 = vector.multi_reduction <maximumf>, %178, %cst_52 [1] : vector<8x8xf32> to vector<8xf32>
    %180 = vector.shape_cast %179 : vector<8xf32> to vector<8x1xf32>
    %181 = vector.broadcast %180 : vector<8x1xf32> to vector<8x8xf32>
    %182 = arith.subf %178, %181 : vector<8x8xf32>
    %183 = math.exp %182 : vector<8x8xf32>
    %cst_53 = arith.constant dense<0.000000e+00> : vector<8xf32>
    %184 = vector.multi_reduction <add>, %183, %cst_53 [1] : vector<8x8xf32> to vector<8xf32>
    %185 = vector.shape_cast %184 : vector<8xf32> to vector<8x1xf32>
    %186 = tpu.reciprocal %185 {approx = true} : vector<8x1xf32> -> vector<8x1xf32>
    %187 = vector.broadcast %186 : vector<8x1xf32> to vector<8x8xf32>
    %188 = arith.mulf %183, %187 : vector<8x8xf32>
    %189 = vector.extract_strided_slice %174 {offsets = [0, 0], sizes = [8, 32], strides = [1, 1]} : vector<8x128xf32> to vector<8x32xf32>
    %cst_54 = arith.constant dense<0.000000e+00> : vector<8x32xf32>
    %190 = tpu.matmul %188, %189, %cst_54 {dimension_numbers = #tpu.dot_dimension_numbers<[1], [0], [0], [1], [0, 0, 1, 1], [], []>} : vector<8x8xf32>, vector<8x32xf32>, vector<8x32xf32> -> vector<8x32xf32>
    %191 = arith.addf %175, %190 : vector<8x32xf32>
    %192 = vector.extract_strided_slice %173 {offsets = [0, 8], sizes = [8, 8], strides = [1, 1]} : vector<8x64xf32> to vector<8x8xf32>
    %193 = vector.extract_strided_slice %173 {offsets = [0, 40], sizes = [8, 8], strides = [1, 1]} : vector<8x64xf32> to vector<8x8xf32>
    %cst_55 = arith.constant dense<0.000000e+00> : vector<8x8xf32>
    %194 = tpu.matmul %192, %193, %cst_55 {dimension_numbers = #tpu.dot_dimension_numbers<[1], [1], [0], [0], [0, 0, 1, 0], [], []>} : vector<8x8xf32>, vector<8x8xf32>, vector<8x8xf32> -> vector<8x8xf32>
    %cst_56 = arith.constant dense<0xFF800000> : vector<8xf32>
    %195 = vector.multi_reduction <maximumf>, %194, %cst_56 [1] : vector<8x8xf32> to vector<8xf32>
    %196 = vector.shape_cast %195 : vector<8xf32> to vector<8x1xf32>
    %197 = vector.broadcast %196 : vector<8x1xf32> to vector<8x8xf32>
    %198 = arith.subf %194, %197 : vector<8x8xf32>
    %199 = math.exp %198 : vector<8x8xf32>
    %cst_57 = arith.constant dense<0.000000e+00> : vector<8xf32>
    %200 = vector.multi_reduction <add>, %199, %cst_57 [1] : vector<8x8xf32> to vector<8xf32>
    %201 = vector.shape_cast %200 : vector<8xf32> to vector<8x1xf32>
    %202 = tpu.reciprocal %201 {approx = true} : vector<8x1xf32> -> vector<8x1xf32>
    %203 = vector.broadcast %202 : vector<8x1xf32> to vector<8x8xf32>
    %204 = arith.mulf %199, %203 : vector<8x8xf32>
    %205 = vector.extract_strided_slice %174 {offsets = [0, 32], sizes = [8, 32], strides = [1, 1]} : vector<8x128xf32> to vector<8x32xf32>
    %cst_58 = arith.constant dense<0.000000e+00> : vector<8x32xf32>
    %206 = tpu.matmul %204, %205, %cst_58 {dimension_numbers = #tpu.dot_dimension_numbers<[1], [0], [0], [1], [0, 0, 1, 1], [], []>} : vector<8x8xf32>, vector<8x32xf32>, vector<8x32xf32> -> vector<8x32xf32>
    %207 = arith.addf %191, %206 : vector<8x32xf32>
    %208 = vector.extract_strided_slice %173 {offsets = [0, 16], sizes = [8, 8], strides = [1, 1]} : vector<8x64xf32> to vector<8x8xf32>
    %209 = vector.extract_strided_slice %173 {offsets = [0, 48], sizes = [8, 8], strides = [1, 1]} : vector<8x64xf32> to vector<8x8xf32>
    %cst_59 = arith.constant dense<0.000000e+00> : vector<8x8xf32>
    %210 = tpu.matmul %208, %209, %cst_59 {dimension_numbers = #tpu.dot_dimension_numbers<[1], [1], [0], [0], [0, 0, 1, 0], [], []>} : vector<8x8xf32>, vector<8x8xf32>, vector<8x8xf32> -> vector<8x8xf32>
    %cst_60 = arith.constant dense<0xFF800000> : vector<8xf32>
    %211 = vector.multi_reduction <maximumf>, %210, %cst_60 [1] : vector<8x8xf32> to vector<8xf32>
    %212 = vector.shape_cast %211 : vector<8xf32> to vector<8x1xf32>
    %213 = vector.broadcast %212 : vector<8x1xf32> to vector<8x8xf32>
    %214 = arith.subf %210, %213 : vector<8x8xf32>
    %215 = math.exp %214 : vector<8x8xf32>
    %cst_61 = arith.constant dense<0.000000e+00> : vector<8xf32>
    %216 = vector.multi_reduction <add>, %215, %cst_61 [1] : vector<8x8xf32> to vector<8xf32>
    %217 = vector.shape_cast %216 : vector<8xf32> to vector<8x1xf32>
    %218 = tpu.reciprocal %217 {approx = true} : vector<8x1xf32> -> vector<8x1xf32>
    %219 = vector.broadcast %218 : vector<8x1xf32> to vector<8x8xf32>
    %220 = arith.mulf %215, %219 : vector<8x8xf32>
    %221 = vector.extract_strided_slice %174 {offsets = [0, 64], sizes = [8, 32], strides = [1, 1]} : vector<8x128xf32> to vector<8x32xf32>
    %cst_62 = arith.constant dense<0.000000e+00> : vector<8x32xf32>
    %222 = tpu.matmul %220, %221, %cst_62 {dimension_numbers = #tpu.dot_dimension_numbers<[1], [0], [0], [1], [0, 0, 1, 1], [], []>} : vector<8x8xf32>, vector<8x32xf32>, vector<8x32xf32> -> vector<8x32xf32>
    %223 = arith.addf %207, %222 : vector<8x32xf32>
    %224 = vector.extract_strided_slice %173 {offsets = [0, 24], sizes = [8, 8], strides = [1, 1]} : vector<8x64xf32> to vector<8x8xf32>
    %225 = vector.extract_strided_slice %173 {offsets = [0, 56], sizes = [8, 8], strides = [1, 1]} : vector<8x64xf32> to vector<8x8xf32>
    %cst_63 = arith.constant dense<0.000000e+00> : vector<8x8xf32>
    %226 = tpu.matmul %224, %225, %cst_63 {dimension_numbers = #tpu.dot_dimension_numbers<[1], [1], [0], [0], [0, 0, 1, 0], [], []>} : vector<8x8xf32>, vector<8x8xf32>, vector<8x8xf32> -> vector<8x8xf32>
    %cst_64 = arith.constant dense<0xFF800000> : vector<8xf32>
    %227 = vector.multi_reduction <maximumf>, %226, %cst_64 [1] : vector<8x8xf32> to vector<8xf32>
    %228 = vector.shape_cast %227 : vector<8xf32> to vector<8x1xf32>
    %229 = vector.broadcast %228 : vector<8x1xf32> to vector<8x8xf32>
    %230 = arith.subf %226, %229 : vector<8x8xf32>
    %231 = math.exp %230 : vector<8x8xf32>
    %cst_65 = arith.constant dense<0.000000e+00> : vector<8xf32>
    %232 = vector.multi_reduction <add>, %231, %cst_65 [1] : vector<8x8xf32> to vector<8xf32>
    %233 = vector.shape_cast %232 : vector<8xf32> to vector<8x1xf32>
    %234 = tpu.reciprocal %233 {approx = true} : vector<8x1xf32> -> vector<8x1xf32>
    %235 = vector.broadcast %234 : vector<8x1xf32> to vector<8x8xf32>
    %236 = arith.mulf %231, %235 : vector<8x8xf32>
    %237 = vector.extract_strided_slice %174 {offsets = [0, 96], sizes = [8, 32], strides = [1, 1]} : vector<8x128xf32> to vector<8x32xf32>
    %cst_66 = arith.constant dense<0.000000e+00> : vector<8x32xf32>
    %238 = tpu.matmul %236, %237, %cst_66 {dimension_numbers = #tpu.dot_dimension_numbers<[1], [0], [0], [1], [0, 0, 1, 1], [], []>} : vector<8x8xf32>, vector<8x32xf32>, vector<8x32xf32> -> vector<8x32xf32>
    %239 = arith.addf %223, %238 : vector<8x32xf32>
    %240 = arith.addf %138, %239 : vector<8x32xf32>
    %241 = vector.broadcast %150 : vector<1x32xf32> to vector<8x32xf32>
    %242 = arith.addf %240, %241 : vector<8x32xf32>
    %cst_67 = arith.constant dense<0.000000e+00> : vector<8xf32>
    %243 = vector.multi_reduction <add>, %242, %cst_67 [1] : vector<8x32xf32> to vector<8xf32>
    %244 = vector.shape_cast %243 : vector<8xf32> to vector<8x1xf32>
    %cst_68 = arith.constant 3.200000e+01 : f32
    %245 = vector.broadcast %cst_68 : f32 to vector<8x1xf32>
    %246 = arith.divf %244, %245 : vector<8x1xf32>
    %247 = vector.broadcast %246 : vector<8x1xf32> to vector<8x32xf32>
    %248 = arith.subf %242, %247 : vector<8x32xf32>
    %249 = arith.mulf %248, %248 : vector<8x32xf32>
    %cst_69 = arith.constant dense<0.000000e+00> : vector<8xf32>
    %250 = vector.multi_reduction <add>, %249, %cst_69 [1] : vector<8x32xf32> to vector<8xf32>
    %251 = vector.shape_cast %250 : vector<8xf32> to vector<8x1xf32>
    %cst_70 = arith.constant 3.200000e+01 : f32
    %252 = vector.broadcast %cst_70 : f32 to vector<8x1xf32>
    %253 = arith.divf %251, %252 : vector<8x1xf32>
    %254 = vector.broadcast %246 : vector<8x1xf32> to vector<8x32xf32>
    %255 = arith.subf %242, %254 : vector<8x32xf32>
    %cst_71 = arith.constant 9.99999974E-6 : f32
    %256 = vector.broadcast %cst_71 : f32 to vector<8x1xf32>
    %257 = arith.addf %253, %256 : vector<8x1xf32>
    %258 = math.rsqrt %257 : vector<8x1xf32>
    %259 = vector.broadcast %258 : vector<8x1xf32> to vector<8x32xf32>
    %260 = arith.mulf %255, %259 : vector<8x32xf32>
    %cst_72 = arith.constant dense<0.000000e+00> : vector<8x128xf32>
    %261 = tpu.matmul %260, %147, %cst_72 {dimension_numbers = #tpu.dot_dimension_numbers<[1], [0], [0], [1], [0, 0, 1, 1], [], []>} : vector<8x32xf32>, vector<32x128xf32>, vector<8x128xf32> -> vector<8x128xf32>
    %262 = vector.broadcast %151 : vector<1x128xf32> to vector<8x128xf32>
    %263 = arith.addf %261, %262 : vector<8x128xf32>
    %cst_73 = arith.constant 5.000000e-01 : f32
    %264 = vector.broadcast %cst_73 : f32 to vector<8x128xf32>
    %265 = arith.mulf %264, %263 : vector<8x128xf32>
    %cst_74 = arith.constant 0.707106769 : f32
    %266 = vector.broadcast %cst_74 : f32 to vector<8x128xf32>
    %267 = arith.mulf %263, %266 : vector<8x128xf32>
    %268 = math.erf %267 : vector<8x128xf32>
    %cst_75 = arith.constant 1.000000e+00 : f32
    %269 = vector.broadcast %cst_75 : f32 to vector<8x128xf32>
    %270 = arith.addf %269, %268 : vector<8x128xf32>
    %271 = arith.mulf %265, %270 : vector<8x128xf32>
    %cst_76 = arith.constant dense<0.000000e+00> : vector<8x32xf32>
    %272 = tpu.matmul %271, %144, %cst_76 {dimension_numbers = #tpu.dot_dimension_numbers<[1], [0], [0], [1], [0, 0, 1, 1], [], []>} : vector<8x128xf32>, vector<128x32xf32>, vector<8x32xf32> -> vector<8x32xf32>
    %273 = vector.broadcast %152 : vector<1x32xf32> to vector<8x32xf32>
    %274 = arith.addf %272, %273 : vector<8x32xf32>
    %275 = arith.addf %242, %274 : vector<8x32xf32>
    %c2_i32 = arith.constant 2 : i32
    %276 = arith.index_cast %c2_i32 : i32 to index
    %c0_77 = arith.constant 0 : index
    %c0_78 = arith.constant 0 : index
    %277 = vector.load %arg2[%276, %c0_77, %c0_78] : memref<3x104x128xf32, #tpu.memory_space<vmem>>, vector<1x104x128xf32>
    %278 = vector.shape_cast %277 : vector<1x104x128xf32> to vector<104x128xf32>
    %279 = arith.index_cast %c2_i32 : i32 to index
    %c0_79 = arith.constant 0 : index
    %c0_80 = arith.constant 0 : index
    %280 = vector.load %arg3[%279, %c0_79, %c0_80] : memref<3x128x32xf32, #tpu.memory_space<vmem>>, vector<1x128x32xf32>
    %281 = vector.shape_cast %280 : vector<1x128x32xf32> to vector<128x32xf32>
    %282 = vector.extract_strided_slice %278 {offsets = [0, 0], sizes = [32, 64], strides = [1, 1]} : vector<104x128xf32> to vector<32x64xf32>
    %283 = vector.extract_strided_slice %278 {offsets = [32, 0], sizes = [32, 128], strides = [1, 1]} : vector<104x128xf32> to vector<32x128xf32>
    %284 = vector.extract_strided_slice %278 {offsets = [64, 0], sizes = [32, 128], strides = [1, 1]} : vector<104x128xf32> to vector<32x128xf32>
    %285 = vector.extract_strided_slice %278 {offsets = [96, 0], sizes = [8, 128], strides = [1, 1]} : vector<104x128xf32> to vector<8x128xf32>
    %286 = vector.extract_strided_slice %285 {offsets = [0, 0], sizes = [1, 64], strides = [1, 1]} : vector<8x128xf32> to vector<1x64xf32>
    %287 = vector.extract_strided_slice %285 {offsets = [1, 0], sizes = [1, 32], strides = [1, 1]} : vector<8x128xf32> to vector<1x32xf32>
    %288 = vector.extract_strided_slice %285 {offsets = [2, 0], sizes = [1, 128], strides = [1, 1]} : vector<8x128xf32> to vector<1x128xf32>
    %289 = vector.extract_strided_slice %285 {offsets = [3, 0], sizes = [1, 32], strides = [1, 1]} : vector<8x128xf32> to vector<1x32xf32>
    %cst_81 = arith.constant dense<0.000000e+00> : vector<8xf32>
    %290 = vector.multi_reduction <add>, %275, %cst_81 [1] : vector<8x32xf32> to vector<8xf32>
    %291 = vector.shape_cast %290 : vector<8xf32> to vector<8x1xf32>
    %cst_82 = arith.constant 3.200000e+01 : f32
    %292 = vector.broadcast %cst_82 : f32 to vector<8x1xf32>
    %293 = arith.divf %291, %292 : vector<8x1xf32>
    %294 = vector.broadcast %293 : vector<8x1xf32> to vector<8x32xf32>
    %295 = arith.subf %275, %294 : vector<8x32xf32>
    %296 = arith.mulf %295, %295 : vector<8x32xf32>
    %cst_83 = arith.constant dense<0.000000e+00> : vector<8xf32>
    %297 = vector.multi_reduction <add>, %296, %cst_83 [1] : vector<8x32xf32> to vector<8xf32>
    %298 = vector.shape_cast %297 : vector<8xf32> to vector<8x1xf32>
    %cst_84 = arith.constant 3.200000e+01 : f32
    %299 = vector.broadcast %cst_84 : f32 to vector<8x1xf32>
    %300 = arith.divf %298, %299 : vector<8x1xf32>
    %301 = vector.broadcast %293 : vector<8x1xf32> to vector<8x32xf32>
    %302 = arith.subf %275, %301 : vector<8x32xf32>
    %cst_85 = arith.constant 9.99999974E-6 : f32
    %303 = vector.broadcast %cst_85 : f32 to vector<8x1xf32>
    %304 = arith.addf %300, %303 : vector<8x1xf32>
    %305 = math.rsqrt %304 : vector<8x1xf32>
    %306 = vector.broadcast %305 : vector<8x1xf32> to vector<8x32xf32>
    %307 = arith.mulf %302, %306 : vector<8x32xf32>
    %cst_86 = arith.constant dense<0.000000e+00> : vector<8x64xf32>
    %308 = tpu.matmul %307, %282, %cst_86 {dimension_numbers = #tpu.dot_dimension_numbers<[1], [0], [0], [1], [0, 0, 1, 1], [], []>} : vector<8x32xf32>, vector<32x64xf32>, vector<8x64xf32> -> vector<8x64xf32>
    %309 = vector.broadcast %286 : vector<1x64xf32> to vector<8x64xf32>
    %310 = arith.addf %308, %309 : vector<8x64xf32>
    %cst_87 = arith.constant dense<0.000000e+00> : vector<8x128xf32>
    %311 = tpu.matmul %307, %283, %cst_87 {dimension_numbers = #tpu.dot_dimension_numbers<[1], [0], [0], [1], [0, 0, 1, 1], [], []>} : vector<8x32xf32>, vector<32x128xf32>, vector<8x128xf32> -> vector<8x128xf32>
    %cst_88 = arith.constant 0.000000e+00 : f32
    %312 = vector.broadcast %cst_88 : f32 to vector<8x32xf32>
    %313 = vector.extract_strided_slice %310 {offsets = [0, 0], sizes = [8, 8], strides = [1, 1]} : vector<8x64xf32> to vector<8x8xf32>
    %314 = vector.extract_strided_slice %310 {offsets = [0, 32], sizes = [8, 8], strides = [1, 1]} : vector<8x64xf32> to vector<8x8xf32>
    %cst_89 = arith.constant dense<0.000000e+00> : vector<8x8xf32>
    %315 = tpu.matmul %313, %314, %cst_89 {dimension_numbers = #tpu.dot_dimension_numbers<[1], [1], [0], [0], [0, 0, 1, 0], [], []>} : vector<8x8xf32>, vector<8x8xf32>, vector<8x8xf32> -> vector<8x8xf32>
    %cst_90 = arith.constant dense<0xFF800000> : vector<8xf32>
    %316 = vector.multi_reduction <maximumf>, %315, %cst_90 [1] : vector<8x8xf32> to vector<8xf32>
    %317 = vector.shape_cast %316 : vector<8xf32> to vector<8x1xf32>
    %318 = vector.broadcast %317 : vector<8x1xf32> to vector<8x8xf32>
    %319 = arith.subf %315, %318 : vector<8x8xf32>
    %320 = math.exp %319 : vector<8x8xf32>
    %cst_91 = arith.constant dense<0.000000e+00> : vector<8xf32>
    %321 = vector.multi_reduction <add>, %320, %cst_91 [1] : vector<8x8xf32> to vector<8xf32>
    %322 = vector.shape_cast %321 : vector<8xf32> to vector<8x1xf32>
    %323 = tpu.reciprocal %322 {approx = true} : vector<8x1xf32> -> vector<8x1xf32>
    %324 = vector.broadcast %323 : vector<8x1xf32> to vector<8x8xf32>
    %325 = arith.mulf %320, %324 : vector<8x8xf32>
    %326 = vector.extract_strided_slice %311 {offsets = [0, 0], sizes = [8, 32], strides = [1, 1]} : vector<8x128xf32> to vector<8x32xf32>
    %cst_92 = arith.constant dense<0.000000e+00> : vector<8x32xf32>
    %327 = tpu.matmul %325, %326, %cst_92 {dimension_numbers = #tpu.dot_dimension_numbers<[1], [0], [0], [1], [0, 0, 1, 1], [], []>} : vector<8x8xf32>, vector<8x32xf32>, vector<8x32xf32> -> vector<8x32xf32>
    %328 = arith.addf %312, %327 : vector<8x32xf32>
    %329 = vector.extract_strided_slice %310 {offsets = [0, 8], sizes = [8, 8], strides = [1, 1]} : vector<8x64xf32> to vector<8x8xf32>
    %330 = vector.extract_strided_slice %310 {offsets = [0, 40], sizes = [8, 8], strides = [1, 1]} : vector<8x64xf32> to vector<8x8xf32>
    %cst_93 = arith.constant dense<0.000000e+00> : vector<8x8xf32>
    %331 = tpu.matmul %329, %330, %cst_93 {dimension_numbers = #tpu.dot_dimension_numbers<[1], [1], [0], [0], [0, 0, 1, 0], [], []>} : vector<8x8xf32>, vector<8x8xf32>, vector<8x8xf32> -> vector<8x8xf32>
    %cst_94 = arith.constant dense<0xFF800000> : vector<8xf32>
    %332 = vector.multi_reduction <maximumf>, %331, %cst_94 [1] : vector<8x8xf32> to vector<8xf32>
    %333 = vector.shape_cast %332 : vector<8xf32> to vector<8x1xf32>
    %334 = vector.broadcast %333 : vector<8x1xf32> to vector<8x8xf32>
    %335 = arith.subf %331, %334 : vector<8x8xf32>
    %336 = math.exp %335 : vector<8x8xf32>
    %cst_95 = arith.constant dense<0.000000e+00> : vector<8xf32>
    %337 = vector.multi_reduction <add>, %336, %cst_95 [1] : vector<8x8xf32> to vector<8xf32>
    %338 = vector.shape_cast %337 : vector<8xf32> to vector<8x1xf32>
    %339 = tpu.reciprocal %338 {approx = true} : vector<8x1xf32> -> vector<8x1xf32>
    %340 = vector.broadcast %339 : vector<8x1xf32> to vector<8x8xf32>
    %341 = arith.mulf %336, %340 : vector<8x8xf32>
    %342 = vector.extract_strided_slice %311 {offsets = [0, 32], sizes = [8, 32], strides = [1, 1]} : vector<8x128xf32> to vector<8x32xf32>
    %cst_96 = arith.constant dense<0.000000e+00> : vector<8x32xf32>
    %343 = tpu.matmul %341, %342, %cst_96 {dimension_numbers = #tpu.dot_dimension_numbers<[1], [0], [0], [1], [0, 0, 1, 1], [], []>} : vector<8x8xf32>, vector<8x32xf32>, vector<8x32xf32> -> vector<8x32xf32>
    %344 = arith.addf %328, %343 : vector<8x32xf32>
    %345 = vector.extract_strided_slice %310 {offsets = [0, 16], sizes = [8, 8], strides = [1, 1]} : vector<8x64xf32> to vector<8x8xf32>
    %346 = vector.extract_strided_slice %310 {offsets = [0, 48], sizes = [8, 8], strides = [1, 1]} : vector<8x64xf32> to vector<8x8xf32>
    %cst_97 = arith.constant dense<0.000000e+00> : vector<8x8xf32>
    %347 = tpu.matmul %345, %346, %cst_97 {dimension_numbers = #tpu.dot_dimension_numbers<[1], [1], [0], [0], [0, 0, 1, 0], [], []>} : vector<8x8xf32>, vector<8x8xf32>, vector<8x8xf32> -> vector<8x8xf32>
    %cst_98 = arith.constant dense<0xFF800000> : vector<8xf32>
    %348 = vector.multi_reduction <maximumf>, %347, %cst_98 [1] : vector<8x8xf32> to vector<8xf32>
    %349 = vector.shape_cast %348 : vector<8xf32> to vector<8x1xf32>
    %350 = vector.broadcast %349 : vector<8x1xf32> to vector<8x8xf32>
    %351 = arith.subf %347, %350 : vector<8x8xf32>
    %352 = math.exp %351 : vector<8x8xf32>
    %cst_99 = arith.constant dense<0.000000e+00> : vector<8xf32>
    %353 = vector.multi_reduction <add>, %352, %cst_99 [1] : vector<8x8xf32> to vector<8xf32>
    %354 = vector.shape_cast %353 : vector<8xf32> to vector<8x1xf32>
    %355 = tpu.reciprocal %354 {approx = true} : vector<8x1xf32> -> vector<8x1xf32>
    %356 = vector.broadcast %355 : vector<8x1xf32> to vector<8x8xf32>
    %357 = arith.mulf %352, %356 : vector<8x8xf32>
    %358 = vector.extract_strided_slice %311 {offsets = [0, 64], sizes = [8, 32], strides = [1, 1]} : vector<8x128xf32> to vector<8x32xf32>
    %cst_100 = arith.constant dense<0.000000e+00> : vector<8x32xf32>
    %359 = tpu.matmul %357, %358, %cst_100 {dimension_numbers = #tpu.dot_dimension_numbers<[1], [0], [0], [1], [0, 0, 1, 1], [], []>} : vector<8x8xf32>, vector<8x32xf32>, vector<8x32xf32> -> vector<8x32xf32>
    %360 = arith.addf %344, %359 : vector<8x32xf32>
    %361 = vector.extract_strided_slice %310 {offsets = [0, 24], sizes = [8, 8], strides = [1, 1]} : vector<8x64xf32> to vector<8x8xf32>
    %362 = vector.extract_strided_slice %310 {offsets = [0, 56], sizes = [8, 8], strides = [1, 1]} : vector<8x64xf32> to vector<8x8xf32>
    %cst_101 = arith.constant dense<0.000000e+00> : vector<8x8xf32>
    %363 = tpu.matmul %361, %362, %cst_101 {dimension_numbers = #tpu.dot_dimension_numbers<[1], [1], [0], [0], [0, 0, 1, 0], [], []>} : vector<8x8xf32>, vector<8x8xf32>, vector<8x8xf32> -> vector<8x8xf32>
    %cst_102 = arith.constant dense<0xFF800000> : vector<8xf32>
    %364 = vector.multi_reduction <maximumf>, %363, %cst_102 [1] : vector<8x8xf32> to vector<8xf32>
    %365 = vector.shape_cast %364 : vector<8xf32> to vector<8x1xf32>
    %366 = vector.broadcast %365 : vector<8x1xf32> to vector<8x8xf32>
    %367 = arith.subf %363, %366 : vector<8x8xf32>
    %368 = math.exp %367 : vector<8x8xf32>
    %cst_103 = arith.constant dense<0.000000e+00> : vector<8xf32>
    %369 = vector.multi_reduction <add>, %368, %cst_103 [1] : vector<8x8xf32> to vector<8xf32>
    %370 = vector.shape_cast %369 : vector<8xf32> to vector<8x1xf32>
    %371 = tpu.reciprocal %370 {approx = true} : vector<8x1xf32> -> vector<8x1xf32>
    %372 = vector.broadcast %371 : vector<8x1xf32> to vector<8x8xf32>
    %373 = arith.mulf %368, %372 : vector<8x8xf32>
    %374 = vector.extract_strided_slice %311 {offsets = [0, 96], sizes = [8, 32], strides = [1, 1]} : vector<8x128xf32> to vector<8x32xf32>
    %cst_104 = arith.constant dense<0.000000e+00> : vector<8x32xf32>
    %375 = tpu.matmul %373, %374, %cst_104 {dimension_numbers = #tpu.dot_dimension_numbers<[1], [0], [0], [1], [0, 0, 1, 1], [], []>} : vector<8x8xf32>, vector<8x32xf32>, vector<8x32xf32> -> vector<8x32xf32>
    %376 = arith.addf %360, %375 : vector<8x32xf32>
    %377 = arith.addf %275, %376 : vector<8x32xf32>
    %378 = vector.broadcast %287 : vector<1x32xf32> to vector<8x32xf32>
    %379 = arith.addf %377, %378 : vector<8x32xf32>
    %cst_105 = arith.constant dense<0.000000e+00> : vector<8xf32>
    %380 = vector.multi_reduction <add>, %379, %cst_105 [1] : vector<8x32xf32> to vector<8xf32>
    %381 = vector.shape_cast %380 : vector<8xf32> to vector<8x1xf32>
    %cst_106 = arith.constant 3.200000e+01 : f32
    %382 = vector.broadcast %cst_106 : f32 to vector<8x1xf32>
    %383 = arith.divf %381, %382 : vector<8x1xf32>
    %384 = vector.broadcast %383 : vector<8x1xf32> to vector<8x32xf32>
    %385 = arith.subf %379, %384 : vector<8x32xf32>
    %386 = arith.mulf %385, %385 : vector<8x32xf32>
    %cst_107 = arith.constant dense<0.000000e+00> : vector<8xf32>
    %387 = vector.multi_reduction <add>, %386, %cst_107 [1] : vector<8x32xf32> to vector<8xf32>
    %388 = vector.shape_cast %387 : vector<8xf32> to vector<8x1xf32>
    %cst_108 = arith.constant 3.200000e+01 : f32
    %389 = vector.broadcast %cst_108 : f32 to vector<8x1xf32>
    %390 = arith.divf %388, %389 : vector<8x1xf32>
    %391 = vector.broadcast %383 : vector<8x1xf32> to vector<8x32xf32>
    %392 = arith.subf %379, %391 : vector<8x32xf32>
    %cst_109 = arith.constant 9.99999974E-6 : f32
    %393 = vector.broadcast %cst_109 : f32 to vector<8x1xf32>
    %394 = arith.addf %390, %393 : vector<8x1xf32>
    %395 = math.rsqrt %394 : vector<8x1xf32>
    %396 = vector.broadcast %395 : vector<8x1xf32> to vector<8x32xf32>
    %397 = arith.mulf %392, %396 : vector<8x32xf32>
    %cst_110 = arith.constant dense<0.000000e+00> : vector<8x128xf32>
    %398 = tpu.matmul %397, %284, %cst_110 {dimension_numbers = #tpu.dot_dimension_numbers<[1], [0], [0], [1], [0, 0, 1, 1], [], []>} : vector<8x32xf32>, vector<32x128xf32>, vector<8x128xf32> -> vector<8x128xf32>
    %399 = vector.broadcast %288 : vector<1x128xf32> to vector<8x128xf32>
    %400 = arith.addf %398, %399 : vector<8x128xf32>
    %cst_111 = arith.constant 5.000000e-01 : f32
    %401 = vector.broadcast %cst_111 : f32 to vector<8x128xf32>
    %402 = arith.mulf %401, %400 : vector<8x128xf32>
    %cst_112 = arith.constant 0.707106769 : f32
    %403 = vector.broadcast %cst_112 : f32 to vector<8x128xf32>
    %404 = arith.mulf %400, %403 : vector<8x128xf32>
    %405 = math.erf %404 : vector<8x128xf32>
    %cst_113 = arith.constant 1.000000e+00 : f32
    %406 = vector.broadcast %cst_113 : f32 to vector<8x128xf32>
    %407 = arith.addf %406, %405 : vector<8x128xf32>
    %408 = arith.mulf %402, %407 : vector<8x128xf32>
    %cst_114 = arith.constant dense<0.000000e+00> : vector<8x32xf32>
    %409 = tpu.matmul %408, %281, %cst_114 {dimension_numbers = #tpu.dot_dimension_numbers<[1], [0], [0], [1], [0, 0, 1, 1], [], []>} : vector<8x128xf32>, vector<128x32xf32>, vector<8x32xf32> -> vector<8x32xf32>
    %410 = vector.broadcast %289 : vector<1x32xf32> to vector<8x32xf32>
    %411 = arith.addf %409, %410 : vector<8x32xf32>
    %412 = arith.addf %379, %411 : vector<8x32xf32>
    %c3_i32 = arith.constant 3 : i32
    %c0_115 = arith.constant 0 : index
    %c0_116 = arith.constant 0 : index
    %c0_117 = arith.constant 0 : index
    %413 = vector.load %arg4[%c0_115, %c0_116, %c0_117] : memref<1x8x32xf32, #tpu.memory_space<vmem>>, vector<1x8x32xf32>
    %414 = vector.shape_cast %413 : vector<1x8x32xf32> to vector<8x32xf32>
    %415 = vector.shape_cast %412 : vector<8x32xf32> to vector<1x8x32xf32>
    tpu.vector_store %arg4[%c0_115, %c0_116, %c0_117], %415 {strides = array<i32>} : memref<1x8x32xf32, #tpu.memory_space<vmem>>, vector<1x8x32xf32>,
    return
  }
  func.func @transform_0(%arg0: i32) -> (i32, i32, i32) {
    %c0_i32 = arith.constant 0 : i32
    %c0_i32_0 = arith.constant 0 : i32
    %c0_i32_1 = arith.constant 0 : i32
    return %arg0, %c0_i32, %c0_i32_0 : i32, i32, i32
  }
  func.func @transform_1(%arg0: i32) -> (i32, i32, i32) {
    %c0_i32 = arith.constant 0 : i32
    %c0_i32_0 = arith.constant 0 : i32
    %c0_i32_1 = arith.constant 0 : i32
    %c0_i32_2 = arith.constant 0 : i32
    return %c0_i32, %c0_i32_0, %c0_i32_1 : i32, i32, i32
  }
  func.func @transform_2(%arg0: i32) -> (i32, i32, i32) {
    %c0_i32 = arith.constant 0 : i32
    %c0_i32_0 = arith.constant 0 : i32
    %c0_i32_1 = arith.constant 0 : i32
    %c0_i32_2 = arith.constant 0 : i32
    return %c0_i32, %c0_i32_0, %c0_i32_1 : i32, i32, i32
  }
  func.func @transform_3(%arg0: i32) -> (i32, i32, i32) {
    %c0_i32 = arith.constant 0 : i32
    %c0_i32_0 = arith.constant 0 : i32
    %c0_i32_1 = arith.constant 0 : i32
    return %arg0, %c0_i32, %c0_i32_0 : i32, i32, i32
  }
}

</mosaic_0001>

<bundles_post_ra>
// kernel: tpu_custom_call.1
= control target key start
LH: loop header
LB: loop body
LE: loop exit
PB: predicated region body
PF: predicated region fallthrough
CT: control target
= control target key end

     0   :  { %8 = vsyncpa [#allocation3], 0  ;;  %s4944_s0 = inlined_call_operand.vmem [shape: f32[2,8,32], index: 0, kind: input, shape index: {}]   ;;  %s4945_s1 = inlined_call_operand.vmem [shape: f32[3,104,128], index: 1, kind: input, shape index: {}]   ;;  %s4946_s2 = inlined_call_operand.vmem [shape: f32[3,128,32], index: 2, kind: input, shape index: {}]   ;;  %s4947_s3 = inlined_call_operand.hbm [shape: f32[2,8,32], index: 3, kind: output, shape index: {}]  }
   0x1   :  { %10 = vsyncpa [#allocation3 + $0x1], 0  ;;  %s4241_s12 = smov 0   ;;  %s4243_s13 = smov 0  }
   0x2   :  { %s4245_s14 = smov 0   ;;  %s4247_s15 = smov 0  }
   0x3 LB: > { %s4262_s16 = sadd.s32 4294967295, %s4206_s15   ;;  %s3320_s17 = sadd.s32 4294967294, %s4206_s15   ;;  %s4206_s15 = sphi %s4247_s15, %s4953_s15   ;;  %s4202_s14 = sphi %s4245_s14, %s4952_s14   ;;  %s4198_s13 = sphi %s4243_s13, %s4951_s13   ;;  %s4194_s12 = sphi %s4241_s12, %s4950_s12  }
   0x4   : > { %s4266_s18 = sadd.s32 1, %s4206_s15   ;;  %s91_s19 = sadd.s32 1, %s4202_s14 }
   0x5   : > { %s88_s20 = ssub.s32 %s4206_s15, %s4266_s18  ;;  %p101_p0 = scmp.ne.s32.totalorder %s4202_s14, %s4198_s13 }
   0x6   : > { %p89_p1 = scmp.eq.s32.totalorder %s88_s20, 0  ;;  %p102_p2 = scmp.eq.s32.totalorder %s4262_s16, 1 }
   0x7   : > { %p107_p3 = scmp.ne.s32.totalorder %s4198_s13, %s4194_s12  ;;  %p108_p4 = scmp.eq.s32.totalorder %s3320_s17, 1 }
   0x8   : > { %s4277_s21 = scalar_select %p89_p1, %s4202_s14, %s91_s19  }
   0x9   : > { %p4279_p5 = por %p102_p2, %p101_p0  ;;  %p4283_p6 = por %p108_p4, %p107_p3 }
   0xa   : > { %p3323_p7 = scmp.ge.s32.totalorder %s4206_s15, 1  ;;  %p139_p8 = scmp.lt.s32.totalorder %s4206_s15, 3 }
   0xc   : > { %p140_p9 = pnand %p3323_p7, %p139_p8 }
   0xd   : > { %p162_p10 = scmp.lt.s32.totalorder (!%p140_p9), %s4262_s16, 1  ;;  %vm196_vm0 = vcmask (!%p140_p9), 261120   ;;  %v167_v7 = vld [vmem:[%s4945_s1] sm:$0xff] (!%p140_p9)  ;;  %v168_v8 = vld [vmem:[%s4945_s1 + $0x8] sm:$0xff] (!%p140_p9)  ;;  %v169_v9 = vld [vmem:[%s4945_s1 + $0x10] sm:$0xff] (!%p140_p9)  ;;  %v4208_v10 = vmov (!%p140_p9), 0.0|0.0   ;;  %v211_v26 = vlaneseq (!%p140_p9) }
   0xe   : > { %143 = sbr.rel (%p140_p9) target bundleno = 8077 (0x1f8d), region = 32  ;;  %3901 = vmatprep.subr.bf16.mxu0 (!%p140_p9), %v4208_v10  ;;  %v3902_v11 = vpack.c.bf16 (!%p140_p9), %v168_v8, %v167_v7  ;;  %v170_v12 = vld [vmem:[%s4945_s1 + $0x18] sm:$0xff] (!%p140_p9)  ;;  %vm4209_vm1 = vmmov (!%p140_p9), 0   ;;  %v4210_v13 = vmov (!%p140_p9), 0.0   ;;  %v171_v18 = vld [vmem:[%s4945_s1 + $0x20] sm:$0xff] (!%p140_p9)  ;;  %v172_v19 = vld [vmem:[%s4945_s1 + $0x28] sm:$0xff] (!%p140_p9) }
   0xf   : > { %3585 = vmatprep.mubr.msk.f32.mxu0 (!%p140_p9), %vm4209_vm1, %v4210_v13  ;;  %3614 = vmatprep.subr.mxu1 (!%p140_p9), %v4210_v13  ;;  %v3905_v14 = vpack.c.bf16 (!%p140_p9), %v170_v12, %v169_v9  ;;  %v3908_v21 = vpack.c.bf16 (!%p140_p9), %v172_v19, %v171_v18  ;;  %v173_v23 = vld [vmem:[%s4945_s1 + $0x30] sm:$0xff] (!%p140_p9)  ;;  %v174_v24 = vld [vmem:[%s4945_s1 + $0x38] sm:$0xff] (!%p140_p9)  ;;  %v4340_v27 = vshrl.u32 (!%p140_p9), %v211_v26, 7  ;;  %v4348_v29 = vld [vmem:[%s4945_s1 + $0x60] sm:$0xff] (!%p140_p9)  ;;  %s4211_s29 = smov (!%p140_p9), 120   ;;  %s4212_s30 = smov (!%p140_p9), 96  }
  0x10   : > { %3616 = vmatprep.mubr.msk.f32.mxu1 (!%p140_p9), %vm4209_vm1, %v4210_v13  ;;  %3903 = vmatpush3.bf16.msra.mxu0 (!%p140_p9), %v3902_v11  ;;  %v3911_v25 = vpack.c.bf16 (!%p140_p9), %v174_v24, %v173_v23  ;;  %s4213_s4 = smov (!%p140_p9), 88   ;;  %vm361_vm2 = vcmask (!%p140_p9), 64512   ;;  %s4214_s5 = smov (!%p140_p9), 112  }
  0x11   : > { %3904 = vmatprep.subr.bf16.mxu0 (!%p140_p9), %v4208_v10  ;;  %v4343_v28 = vsub.s32 (!%p140_p9), 0, %v4340_v27  ;;  %s4215_s6 = smov (!%p140_p9), 72   ;;  %s4216_s7 = smov (!%p140_p9), 104  }
  0x12   : > { %s4217_s8 = smov (!%p140_p9), 80   ;;  %s4218_s9 = smov (!%p140_p9), 32  }
  0x13   : > { %v214_v30 = vrot.slane (!%p140_p9), %v4348_v29, %v4343_v28  ;;  %s4219_s10 = smov (!%p140_p9), 64   ;;  %s4220_s20 = smov (!%p140_p9), [#allocation2]  }
  0x14   : > { %3906 = vmatpush3.bf16.msra.mxu0 (!%p140_p9), %v3905_v14 }
  0x15   : > { %s163_s24 = scalar_select %p162_p10, %s4262_s16, 1  ;;  %3907 = vmatprep.subr.bf16.mxu0 %v4208_v10 }
  0x17   : > { %s3325_s25 = sshll.u32 %s163_s24, 3  ;;  %s4148_s24 = sshll.u32 %s4220_s20, 4  ;;  %s4149_s24 = int_to_ptr.vmem [resolvable:$false] %s4148_s24 }
  0x18   : > { %s165_s28 = scalar_lea.vmem %s4944_s0, %s3325_s25  ;;  %s4150_s25 = scalar_lea.vmem %s4149_s24, 256 }
  0x19   : > { %v4294_v0 = vld [vmem:[%s165_s28] sm:$0xff] }
  0x1a   : > { %v197_v1 = vsel %vm196_vm0, %v4294_v0, 0.0 }
  0x1b   : > { %198 = vadd.xlane.f32.xlu0 %v197_v1 }
  0xa8   : > { %v199_v2 = vpop.xlane.xlu0 %198 }
  0xa9   : > { %v201_v3 = vmul.f32 0.03125, %v199_v2 }
  0xab   : > { %v202_v4 = vsub.f32 %v4294_v0, %v201_v3 }
  0xad   : > { %v203_v5 = vmul.f32 %v202_v4, %v202_v4 }
  0xaf   : > { %v204_v6 = vsel %vm196_vm0, %v203_v5, 0.0 }
  0xb0   : > { %205 = vadd.xlane.f32.xlu0 %v204_v6 }
 0x13d   : > { %v206_v15 = vpop.xlane.xlu0 %205 }
 0x13e   : > { %v207_v16 = vmul.f32 0.03125, %v206_v15 }
 0x140   : > { %v208_v17 = vadd.f32 1e-05, %v207_v16 }
 0x142   : > { %4078 = vrsqrt.f32 %v208_v17 }
 0x14c   : > { %v4079_v20 = vpop.eup %4078 }
 0x14d   : > { %v210_v22 = vmul.f32 %v4079_v20, %v202_v4 }
 0x14f   : > { %3586 = vmatmul.mubr.msk.f32.vlgmr.msra.gmra.mrb[0].mxu0 %vm196_vm0, %v210_v22 }
 0x150   : > { %3909 = vmatpush3.bf16.msra.mxu0 %v3908_v21  ;;  %3596 = vmatprep.mubr.msk.f32.mxu0 %vm4209_vm1, %v4210_v13 }
 0x151   : > { %3910 = vmatprep.subr.bf16.mxu0 %v4208_v10 }
 0x154   : > { %3912 = vmatpush3.bf16.msra.mxu0 %v3911_v25 }
 0x155   : > { %3599 = vmatprep.subr.mxu0 %v4210_v13 }
 0x157   : > { %3597 = vmatmul.mubr.msk.f32.vlgmr.msra.gmra.mrb[2].mxu0 %vm196_vm0, %v210_v22 }
 0x158   : > { %3601 = vmatprep.mubr.msk.f32.mxu0 %vm4209_vm1, %v4210_v13 }
 0x222   : > { %v284_v31 = vpop.f32.mrb[0].mxu0 }
 0x223   : > { %v285_v32 = vadd.f32 %v284_v31, %v214_v30  ;;  %v3587_v33 = vpop.f32.mrb[1].mxu0 }
 0x225   : > { %447 = vrot.lane.b32.xlu0 %v285_v32, %s4211_s29  ;;  %359 = vrot.lane.b32.xlu1 %v285_v32, %s4212_s30 }
 0x229   : > { %449 = vrot.lane.b32.xlu1 %v285_v32, %s4213_s4 }
 0x22a   : > { %v4355_v34 = vpop.f32.mrb[2].mxu0 }
 0x22b   : > { %v3598_v35 = vpop.f32.mrb[3].mxu0  ;;  %3615 = vmatpush3.msra.mxu1 %v4355_v34 }
 0x22c   : > { %3624 = vmatprep.subr.mxu1 %v4210_v13 }
 0x297   : > { %v360_v36 = vpop.permute.xlu1 %359  ;;  %v448_v38 = vpop.permute.xlu0 %447 }
 0x298   : > { %3600 = vmatpush3.xpose.msk.msra.mxu0 %vm361_vm2, %v360_v36 }
 0x299   : > { %3604 = vmatprep.subr.mxu0 %v4210_v13 }
 0x29b   : > { %3602 = vmatmul.mubr.msk.f32.vlgmr.msra.gmra.mrb[4].mxu0 %vm361_vm2, %v285_v32  ;;  %v450_v37 = vpop.permute.xlu1 %449 }
 0x29c   : > { %3605 = vmatpush3.xpose.msk.msra.mxu0 %vm361_vm2, %v450_v37  ;;  %3606 = vmatprep.mubr.msk.f32.mxu0 %vm4209_vm1, %v4210_v13 }
 0x29d   : > { %3609 = vmatprep.subr.mxu0 %v4210_v13 }
 0x29f   : > { %3607 = vmatmul.mubr.msk.f32.vlgmr.msra.gmra.mrb[6].mxu0 %vm361_vm2, %v448_v38 }
 0x2a0   : > { %3611 = vmatprep.mubr.msk.f32.mxu0 %vm4209_vm1, %v4210_v13 }
 0x36e   : > { %v432_v39 = vpop.f32.mrb[4].mxu0 }
 0x36f   : > { %v3603_v40 = vpop.f32.mrb[5].mxu0  ;;  %v436_v44 = vsel %vm361_vm2, %v432_v39, -inf }
 0x370   : > { %v4413_v40 = vsub.s32 1, %v4340_v27 }
 0x372   : > { %v521_v41 = vpop.f32.mrb[6].mxu0 }
 0x373   : > { %v3608_v42 = vpop.f32.mrb[7].mxu0  ;;  %v525_v43 = vsel %vm361_vm2, %v521_v41, -inf }
 0x374   : > { %526 = vmax.xlane.f32.xlu1 %v525_v43  ;;  %v1022_v43 = vrot.slane %v4348_v29, %v4413_v40 }
 0x385   : > { %537 = vrot.lane.b32.xlu1 %v4355_v34, %s4212_s30 }
 0x389   : > { %686 = vrot.lane.b32.xlu1 %v285_v32, %s4214_s5 }
 0x38d   : > { %854 = vrot.lane.b32.xlu1 %v285_v32, %s4215_s6 }
 0x391   : > { %852 = vrot.lane.b32.xlu1 %v285_v32, %s4216_s7 }
 0x3b5   : > { %437 = vmax.xlane.f32.xlu1 %v436_v44 }
 0x401   : > { %v527_v45 = vpop.xlane.xlu1 %526 }
 0x402   : > { %v528_v46 = vsub.f32 %v521_v41, %v527_v45 }
 0x404   : > { %v529_v47 = vmul.f32 1.442695, %v528_v46 }
 0x405   : > { %v538_v48 = vpop.permute.xlu1 %537 }
 0x406   : > { %4080 = vpow2.f32 %v529_v47  ;;  %3610 = vmatpush3.msra.mxu0 %v538_v48 }
 0x407   : > { %3619 = vmatprep.subr.mxu0 %v4210_v13 }
 0x409   : > { %v687_v52 = vpop.permute.xlu1 %686 }
 0x40d   : > { %v855_v56 = vpop.permute.xlu1 %854 }
 0x410   : > { %v4081_v49 = vpop.eup %4080 }
 0x411   : > { %v531_v50 = vsel %vm361_vm2, %v4081_v49, 0.0  ;;  %v853_v57 = vpop.permute.xlu1 %852 }
 0x412   : > { %532 = vadd.xlane.f32.xlu0 %v531_v50 }
 0x428   : > { %688 = vrot.lane.b32.xlu0 %v285_v32, %s4217_s8 }
 0x442   : > { %v438_v58 = vpop.xlane.xlu1 %437 }
 0x443   : > { %v439_v59 = vsub.f32 %v432_v39, %v438_v58  ;;  %v180_v58 = vld [vmem:[%s4946_s2] sm:$0xff] }
 0x445   : > { %v440_v60 = vmul.f32 1.442695, %v439_v59  ;;  %v181_v59 = vld [vmem:[%s4946_s2 + $0x8] sm:$0xff] }
 0x49f   : > { %v533_v51 = vpop.xlane.xlu0 %532 }
 0x4a0   : > { %4082 = vrcp.f32 %v533_v51 }
 0x4a1   : > { %4084 = vpow2.f32 %v440_v60  ;;  %v182_v60 = vld [vmem:[%s4946_s2 + $0x10] sm:$0xff] }
 0x4a3   : > { %v689_v55 = vpop.permute.xlu0 %688 }
 0x4aa   : > { %v4083_v53 = vpop.eup %4082 }
 0x4ab   : > { %v535_v54 = vmul.f32 %v4083_v53, %v4081_v49  ;;  %v4085_v6 = vpop.eup %4084  ;;  %v175_v53 = vld [vmem:[%s4945_s1 + $0x40] sm:$0xff] }
 0x4ac   : > { %v442_v7 = vsel %vm361_vm2, %v4085_v6, 0.0 }
 0x4ad   : > { %3612 = vmatmul.mubr.msk.f32.vlgmr.msra.gmra.mrb[8].mxu0 %vm361_vm2, %v535_v54  ;;  %v177_v54 = vld [vmem:[%s4945_s1 + $0x50] sm:$0xff] }
 0x4ae   : > { %3620 = vmatpush3.xpose.msk.msra.mxu0 %vm361_vm2, %v689_v55  ;;  %3621 = vmatprep.mubr.msk.f32.mxu0 %vm4209_vm1, %v4210_v13 }
 0x4af   : > { %3629 = vmatprep.subr.mxu0 %v4210_v13 }
 0x4b1   : > { %3622 = vmatmul.mubr.msk.f32.vlgmr.msra.gmra.mrb[10].mxu0 %vm361_vm2, %v687_v52 }
 0x4b2   : > { %3630 = vmatpush3.xpose.msk.msra.mxu0 %vm361_vm2, %v855_v56  ;;  %3631 = vmatprep.mubr.msk.f32.mxu0 %vm4209_vm1, %v4210_v13  ;;  %v178_v56 = vld [vmem:[%s4945_s1 + $0x58] sm:$0xff] }
 0x4b3   : > { %3913 = vmatprep.subr.bf16.mxu0 %v4208_v10 }
 0x4b5   : > { %3632 = vmatmul.mubr.msk.f32.vlgmr.msra.gmra.mrb[12].mxu0 %vm361_vm2, %v853_v57  ;;  %v3917_v57 = vpack.c.bf16 %v178_v56, %v177_v54 }
 0x4b6   : > { %3647 = vmatprep.mubr.msk.f32.mxu0 %vm4209_vm1, %v4210_v13 }
 0x580   : > { %v609_v61 = vpop.f32.mrb[8].mxu0 }
 0x581   : > { %v3613_v62 = vpop.f32.mrb[9].mxu0 }
 0x582   : > { %v183_v62 = vld [vmem:[%s4946_s2 + $0x18] sm:$0xff] }
 0x584   : > { %v760_v63 = vpop.f32.mrb[10].mxu0 }
 0x585   : > { %v3623_v1 = vpop.f32.mrb[11].mxu0  ;;  %v764_v2 = vsel %vm361_vm2, %v760_v63, -inf }
 0x586   : > { %765 = vmax.xlane.f32.xlu0 %v764_v2  ;;  %v184_v1 = vld [vmem:[%s4946_s2 + $0x20] sm:$0xff]  ;;  %v185_v2 = vld [vmem:[%s4946_s2 + $0x28] sm:$0xff] }
 0x588   : > { %v926_v3 = vpop.f32.mrb[12].mxu0 }
 0x589   : > { %v3633_v4 = vpop.f32.mrb[13].mxu0  ;;  %v930_v5 = vsel %vm361_vm2, %v926_v3, -inf }
 0x58a   : > { %931 = vmax.xlane.f32.xlu1 %v930_v5 }
 0x58e   : > { %443 = vadd.xlane.f32.xlu1 %v442_v7 }
 0x613   : > { %v766_v8 = vpop.xlane.xlu0 %765 }
 0x614   : > { %v767_v9 = vsub.f32 %v760_v63, %v766_v8  ;;  %v3923_v63 = vpack.c.bf16 %v183_v62, %v182_v60 }
 0x616   : > { %v768_v11 = vmul.f32 1.442695, %v767_v9  ;;  %v186_v9 = vld [vmem:[%s4946_s2 + $0x30] sm:$0xff] }
 0x617   : > { %v932_v12 = vpop.xlane.xlu1 %931 }
 0x618   : > { %4086 = vpow2.f32 %v768_v11  ;;  %v933_v14 = vsub.f32 %v926_v3, %v932_v12  ;;  %v3926_v3 = vpack.c.bf16 %v185_v2, %v184_v1  ;;  %v187_v11 = vld [vmem:[%s4946_s2 + $0x38] sm:$0xff]  ;;  %v3348_v1 = vld [vmem:[%s4945_s1 + $0xa0] sm:$0xff] }
 0x619   : > { %v3929_v12 = vpack.c.bf16 %v187_v11, %v186_v9 }
 0x61a   : > { %v934_v15 = vmul.f32 1.442695, %v933_v14  ;;  %v188_v14 = vld [vmem:[%s4946_s2 + $0x40] sm:$0xff] }
 0x61b   : > { %v444_v16 = vpop.xlane.xlu1 %443 }
 0x61c   : > { %4088 = vpow2.f32 %v934_v15  ;;  %v189_v15 = vld [vmem:[%s4946_s2 + $0x48] sm:$0xff] }
 0x61d   : > { %4090 = vrcp.f32 %v444_v16  ;;  %v3932_v16 = vpack.c.bf16 %v189_v15, %v188_v14 }
 0x622   : > { %v4087_v17 = vpop.eup %4086 }
 0x623   : > { %v770_v18 = vsel %vm361_vm2, %v4087_v17, 0.0 }
 0x624   : > { %771 = vadd.xlane.f32.xlu0 %v770_v18  ;;  %v191_v18 = vld [vmem:[%s4946_s2 + $0x58] sm:$0xff] }
 0x626   : > { %v4089_v19 = vpop.eup %4088 }
 0x627   : > { %v4091_v20 = vpop.eup %4090  ;;  %v936_v21 = vsel %vm361_vm2, %v4089_v19, 0.0 }
 0x628   : > { %937 = vadd.xlane.f32.xlu1 %v936_v21  ;;  %v446_v22 = vmul.f32 %v4091_v20, %v4085_v6  ;;  %v192_v20 = vld [vmem:[%s4946_s2 + $0x60] sm:$0xff]  ;;  %v193_v21 = vld [vmem:[%s4946_s2 + $0x68] sm:$0xff] }
 0x62a   : > { %3617 = vmatmul.mubr.msk.f32.vlgmr.msra.gmra.mrb[0].mxu1 %vm361_vm2, %v446_v22  ;;  %v3938_v22 = vpack.c.bf16 %v193_v21, %v192_v20 }
 0x62b   : > { %3626 = vmatprep.mubr.msk.f32.mxu1 %vm4209_vm1, %v4210_v13 }
 0x639   : > { %941 = vrot.lane.b32.xlu1 %v4355_v34, %s4218_s9 }
 0x63a   : > { %775 = vrot.lane.b32.xlu0 %v4355_v34, %s4219_s10 }
 0x6b1   : > { %v772_v23 = vpop.xlane.xlu0 %771 }
 0x6b2   : > { %4092 = vrcp.f32 %v772_v23  ;;  %v194_v23 = vld [vmem:[%s4946_s2 + $0x70] sm:$0xff] }
 0x6b5   : > { %v776_v24 = vpop.permute.xlu0 %775  ;;  %v938_v25 = vpop.xlane.xlu1 %937 }
 0x6b6   : > { %4094 = vrcp.f32 %v938_v25  ;;  %3625 = vmatpush3.msra.mxu1 %v776_v24  ;;  %v195_v24 = vld [vmem:[%s4946_s2 + $0x78] sm:$0xff] }
 0x6b7   : > { %3634 = vmatprep.subr.mxu1 %v4210_v13  ;;  %v3941_v25 = vpack.c.bf16 %v195_v24, %v194_v23 }
 0x6b9   : > { %v942_v31 = vpop.permute.xlu1 %941 }
 0x6bc   : > { %v4093_v26 = vpop.eup %4092 }
 0x6bd   : > { %v774_v30 = vmul.f32 %v4093_v26, %v4087_v17  ;;  %v190_v17 = vld [vmem:[%s4946_s2 + $0x50] sm:$0xff]  ;;  %v4498_v26 = vsub.s32 2, %v4340_v27 }
 0x6bf   : > { %3627 = vmatmul.mubr.msk.f32.vlgmr.msra.gmra.mrb[2].mxu1 %vm361_vm2, %v774_v30  ;;  %v1040_v30 = vrot.slane %v4348_v29, %v4498_v26 }
 0x6c0   : > { %v4095_v32 = vpop.eup %4094  ;;  %3635 = vmatpush3.msra.mxu1 %v942_v31  ;;  %3636 = vmatprep.mubr.msk.f32.mxu1 %vm4209_vm1, %v4210_v13 }
 0x6c1   : > { %v940_v33 = vmul.f32 %v4095_v32, %v4089_v19  ;;  %3919 = vmatprep.subr.bf16.mxu1 %v4208_v10  ;;  %v3935_v19 = vpack.c.bf16 %v191_v18, %v190_v17 }
 0x6c3   : > { %3637 = vmatmul.mubr.msk.f32.vlgmr.msra.gmra.mrb[4].mxu1 %vm361_vm2, %v940_v33 }
 0x6c4   : > { %3682 = vmatprep.mubr.msk.f32.mxu1 %vm4209_vm1, %v4210_v13 }
 0x6fd   : > { %v682_v34 = vpop.f32.mrb[0].mxu1 }
 0x6fe   : > { %v683_v35 = vadd.f32 %v682_v34, %v609_v61  ;;  %v3618_v36 = vpop.f32.mrb[1].mxu1  ;;  %v3920_v61 = vpack.c.bf16 %v181_v59, %v180_v58  ;;  %v3345_v58 = vld [vmem:[%s4945_s1 + $0x88] sm:$0xff]  ;;  %v3346_v59 = vld [vmem:[%s4945_s1 + $0x90] sm:$0xff] }
 0x700   : > { %3921 = vmatpush3.bf16.msra.mxu1 %v3920_v61  ;;  %v3950_v61 = vpack.c.bf16 %v3346_v59, %v3345_v58 }
 0x701   : > { %3922 = vmatprep.subr.bf16.mxu1 %v4208_v10 }
 0x704   : > { %3924 = vmatpush3.bf16.msra.mxu1 %v3923_v63  ;;  %v3347_v63 = vld [vmem:[%s4945_s1 + $0x98] sm:$0xff] }
 0x705   : > { %3925 = vmatprep.subr.bf16.mxu1 %v4208_v10  ;;  %v3953_v2 = vpack.c.bf16 %v3348_v1, %v3347_v63 }
 0x708   : > { %3927 = vmatpush3.bf16.msra.mxu1 %v3926_v3  ;;  %v4553_v3 = vld [vmem:[%s4945_s1 + $0xc8] sm:$0xff] }
 0x709   : > { %3928 = vmatprep.subr.bf16.mxu1 %v4208_v10 }
 0x70c   : > { %3930 = vmatpush3.bf16.msra.mxu1 %v3929_v12 }
 0x70d   : > { %3931 = vmatprep.subr.bf16.mxu1 %v4208_v10 }
 0x710   : > { %3933 = vmatpush3.bf16.msra.mxu1 %v3932_v16 }
 0x711   : > { %3934 = vmatprep.subr.bf16.mxu1 %v4208_v10 }
 0x714   : > { %3936 = vmatpush3.bf16.msra.mxu1 %v3935_v19 }
 0x715   : > { %3937 = vmatprep.subr.bf16.mxu1 %v4208_v10 }
 0x718   : > { %3939 = vmatpush3.bf16.msra.mxu1 %v3938_v22 }
 0x719   : > { %3940 = vmatprep.subr.bf16.mxu1 %v4208_v10 }
 0x71c   : > { %3942 = vmatpush3.bf16.msra.mxu1 %v3941_v25 }
 0x71d   : > { %3722 = vmatprep.subr.mxu1 %v4210_v13 }
 0x792   : > { %v847_v37 = vpop.f32.mrb[2].mxu1 }
 0x793   : > { %v851_v38 = vadd.f32 %v847_v37, %v683_v35  ;;  %v3628_v39 = vpop.f32.mrb[3].mxu1 }
 0x794   : > { %v4505_v39 = vsub.s32 3, %v4340_v27 }
 0x796   : > { %v1013_v41 = vpop.f32.mrb[4].mxu1 }
 0x797   : > { %v1017_v42 = vadd.f32 %v1013_v41, %v851_v38  ;;  %v3638_v44 = vpop.f32.mrb[5].mxu1  ;;  %v1122_v41 = vrot.slane %v4348_v29, %v4505_v39  ;;  %v3341_v29 = vld [vmem:[%s4945_s1 + $0x68] sm:$0xff] }
 0x799   : > { %v1018_v45 = vadd.f32 %v1017_v42, %v4294_v0  ;;  %v176_v0 = vld [vmem:[%s4945_s1 + $0x48] sm:$0xff] }
 0x79a   : > { %v3914_v55 = vpack.c.bf16 %v176_v0, %v175_v53  ;;  %v3344_v0 = vld [vmem:[%s4945_s1 + $0x80] sm:$0xff] }
 0x79b   : > { %v4418_v46 = vadd.f32 %v1022_v43, %v1018_v45 }
 0x79c   : > { %3915 = vmatpush3.bf16.msra.mxu0 %v3914_v55 }
 0x79d   : > { %v1024_v47 = vsel %vm196_vm0, %v4418_v46, 0.0  ;;  %3916 = vmatprep.subr.bf16.mxu0 %v4208_v10 }
 0x79e   : > { %1025 = vadd.xlane.f32.xlu1 %v1024_v47 }
 0x7a0   : > { %3918 = vmatpush3.bf16.msra.mxu0 %v3917_v57 }
 0x7a1   : > { %3943 = vmatprep.subr.bf16.mxu0 %v4208_v10 }
 0x82b   : > { %v1026_v48 = vpop.xlane.xlu1 %1025 }
 0x82c   : > { %v1027_v49 = vmul.f32 0.03125, %v1026_v48 }
 0x82e   : > { %v1028_v50 = vsub.f32 %v4418_v46, %v1027_v49 }
 0x830   : > { %v1029_v51 = vmul.f32 %v1028_v50, %v1028_v50 }
 0x832   : > { %v1030_v52 = vsel %vm196_vm0, %v1029_v51, 0.0 }
 0x833   : > { %1031 = vadd.xlane.f32.xlu0 %v1030_v52  ;;  %v3343_v52 = vld [vmem:[%s4945_s1 + $0x78] sm:$0xff] }
 0x834   : > { %v3947_v54 = vpack.c.bf16 %v3344_v0, %v3343_v52 }
 0x8c0   : > { %v1032_v4 = vpop.xlane.xlu0 %1031 }
 0x8c1   : > { %v1033_v5 = vmul.f32 0.03125, %v1032_v4  ;;  %v1241_v4 = vrot.slane %v4553_v3, %v4343_v28 }
 0x8c3   : > { %v1034_v6 = vadd.f32 1e-05, %v1033_v5 }
 0x8c5   : > { %4096 = vrsqrt.f32 %v1034_v6 }
 0x8cf   : > { %v4097_v7 = vpop.eup %4096 }
 0x8d0   : > { %v1036_v8 = vmul.f32 %v4097_v7, %v1028_v50 }
 0x8d2   : > { %3648 = vmatmul.mubr.msk.f32.vlgmr.msra.gmra.mrb[14].mxu0 %vm196_vm0, %v1036_v8 }
 0x8d3   : > { %3693 = vmatprep.mubr.msk.f32.mxu0 %vm4209_vm1, %v4210_v13 }
 0x9a5   : > { %v1110_v31 = vpop.f32.mrb[14].mxu0 }
 0x9a6   : > { %v1111_v32 = vadd.f32 %v1110_v31, %v1040_v30  ;;  %v3649_v33 = vpop.f32.mrb[15].mxu0 }
 0x9a8   : > { %v1115_v34 = vmul.f32 0.70710677, %v1111_v32  ;;  %v1114_v36 = vmul.f32 0.5, %v1111_v32 }
 0x9aa   : > { %4098 = verf.f32 %v1115_v34 }
 0x9b4   : > { %v4099_v35 = vpop.eup %4098 }
 0x9b5   : > { %v1117_v37 = vadd.f32 1.0, %v4099_v35 }
 0x9b7   : > { %v1118_v38 = vmul.f32 %v1117_v37, %v1114_v36 }
 0x9b9   : > { %3683 = vmatmul.mubr.f32.vlgmr.msra.gmra.mrb[6].mxu1 %v1118_v38 }
 0x9ba   : > { %3724 = vmatprep.mubr.msk.f32.mxu1 %vm4209_vm1, %v4210_v13 }
 0xa8c   : > { %v1189_v42 = vpop.f32.mrb[6].mxu1 }
 0xa8d   : > { %v1190_v43 = vadd.f32 %v1189_v42, %v1122_v41  ;;  %v3684_v44 = vpop.f32.mrb[7].mxu1 }
 0xa8f   : > { %v4510_v45 = vadd.f32 %v1190_v43, %v4418_v46  ;;  %v3342_v46 = vld [vmem:[%s4945_s1 + $0x70] sm:$0xff] }
 0xa90   : > { %v3944_v53 = vpack.c.bf16 %v3342_v46, %v3341_v29 }
 0xa91   : > { %v1225_v47 = vsel %vm196_vm0, %v4510_v45, 0.0 }
 0xa92   : > { %1226 = vadd.xlane.f32.xlu0 %v1225_v47  ;;  %3945 = vmatpush3.bf16.msra.mxu0 %v3944_v53 }
 0xa93   : > { %3946 = vmatprep.subr.bf16.mxu0 %v4208_v10 }
 0xa96   : > { %3948 = vmatpush3.bf16.msra.mxu0 %v3947_v54 }
 0xa97   : > { %3949 = vmatprep.subr.bf16.mxu0 %v4208_v10 }
 0xb1f   : > { %v1227_v48 = vpop.xlane.xlu0 %1226 }
 0xb20   : > { %v1228_v49 = vmul.f32 0.03125, %v1227_v48 }
 0xb22   : > { %v1229_v50 = vsub.f32 %v4510_v45, %v1228_v49 }
 0xb24   : > { %v1230_v51 = vmul.f32 %v1229_v50, %v1229_v50 }
 0xb26   : > { %v1231_v27 = vsel %vm196_vm0, %v1230_v51, 0.0 }
 0xb27   : > { %1232 = vadd.xlane.f32.xlu1 %v1231_v27 }
 0xbb4   : > { %v1233_v55 = vpop.xlane.xlu1 %1232 }
 0xbb5   : > { %v1234_v56 = vmul.f32 0.03125, %v1233_v55 }
 0xbb7   : > { %v1235_v57 = vadd.f32 1e-05, %v1234_v56 }
 0xbb9   : > { %4100 = vrsqrt.f32 %v1235_v57 }
 0xbc3   : > { %v4101_v60 = vpop.eup %4100 }
 0xbc4   : > { %v1237_v62 = vmul.f32 %v4101_v60, %v1229_v50 }
 0xbc6   : > { %3694 = vmatmul.mubr.msk.f32.vlgmr.msra.gmra.mrb[16].mxu0 %vm196_vm0, %v1237_v62 }
 0xbc7   : > { %3951 = vmatpush3.bf16.msra.mxu0 %v3950_v61  ;;  %3704 = vmatprep.mubr.msk.f32.mxu0 %vm4209_vm1, %v4210_v13 }
 0xbc8   : > { %3952 = vmatprep.subr.bf16.mxu0 %v4208_v10 }
 0xbcb   : > { %3954 = vmatpush3.bf16.msra.mxu0 %v3953_v2 }
 0xbcc   : > { %3707 = vmatprep.subr.mxu0 %v4210_v13 }
 0xbce   : > { %3705 = vmatmul.mubr.msk.f32.vlgmr.msra.gmra.mrb[18].mxu0 %vm196_vm0, %v1237_v62 }
 0xbcf   : > { %3709 = vmatprep.mubr.msk.f32.mxu0 %vm4209_vm1, %v4210_v13 }
 0xc99   : > { %v1311_v5 = vpop.f32.mrb[16].mxu0 }
 0xc9a   : > { %v1312_v6 = vadd.f32 %v1311_v5, %v1241_v4  ;;  %v3695_v7 = vpop.f32.mrb[17].mxu0 }
 0xc9c   : > { %1475 = vrot.lane.b32.xlu1 %v1312_v6, %s4213_s4  ;;  %1386 = vrot.lane.b32.xlu0 %v1312_v6, %s4212_s30 }
 0xca0   : > { %1473 = vrot.lane.b32.xlu1 %v1312_v6, %s4211_s29 }
 0xca1   : > { %v4560_v8 = vpop.f32.mrb[18].mxu0 }
 0xca2   : > { %v3706_v9 = vpop.f32.mrb[19].mxu0  ;;  %3723 = vmatpush3.msra.mxu1 %v4560_v8 }
 0xca3   : > { %3732 = vmatprep.subr.mxu1 %v4210_v13 }
 0xca4   : > { %1714 = vrot.lane.b32.xlu1 %v1312_v6, %s4217_s8 }
 0xd0e   : > { %v1387_v11 = vpop.permute.xlu0 %1386  ;;  %v1476_v12 = vpop.permute.xlu1 %1475 }
 0xd0f   : > { %3708 = vmatpush3.xpose.msk.msra.mxu0 %vm361_vm2, %v1387_v11 }
 0xd10   : > { %3712 = vmatprep.subr.mxu0 %v4210_v13 }
 0xd12   : > { %3710 = vmatmul.mubr.msk.f32.vlgmr.msra.gmra.mrb[20].mxu0 %vm361_vm2, %v1312_v6  ;;  %v1474_v14 = vpop.permute.xlu1 %1473 }
 0xd13   : > { %3713 = vmatpush3.xpose.msk.msra.mxu0 %vm361_vm2, %v1476_v12  ;;  %3714 = vmatprep.mubr.msk.f32.mxu0 %vm4209_vm1, %v4210_v13 }
 0xd14   : > { %3717 = vmatprep.subr.mxu0 %v4210_v13 }
 0xd16   : > { %3715 = vmatmul.mubr.msk.f32.vlgmr.msra.gmra.mrb[22].mxu0 %vm361_vm2, %v1474_v14  ;;  %v1715_v31 = vpop.permute.xlu1 %1714 }
 0xd17   : > { %3719 = vmatprep.mubr.msk.f32.mxu0 %vm4209_vm1, %v4210_v13 }
 0xde5   : > { %v1458_v15 = vpop.f32.mrb[20].mxu0 }
 0xde6   : > { %v3711_v16 = vpop.f32.mrb[21].mxu0  ;;  %v1462_v30 = vsel %vm361_vm2, %v1458_v15, -inf }
 0xde9   : > { %v1547_v17 = vpop.f32.mrb[22].mxu0 }
 0xdea   : > { %v3716_v18 = vpop.f32.mrb[23].mxu0  ;;  %v1551_v19 = vsel %vm361_vm2, %v1547_v17, -inf }
 0xdeb   : > { %1552 = vmax.xlane.f32.xlu0 %v1551_v19 }
 0xe01   : > { %1563 = vrot.lane.b32.xlu0 %v4560_v8, %s4212_s30 }
 0xe05   : > { %1712 = vrot.lane.b32.xlu0 %v1312_v6, %s4214_s5 }
 0xe09   : > { %1878 = vrot.lane.b32.xlu0 %v1312_v6, %s4216_s7 }
 0xe78   : > { %v1553_v20 = vpop.xlane.xlu0 %1552 }
 0xe79   : > { %v1554_v21 = vsub.f32 %v1547_v17, %v1553_v20  ;;  %v2048_v20 = vrot.slane %v4553_v3, %v4413_v40 }
 0xe7b   : > { %v1555_v22 = vmul.f32 1.442695, %v1554_v21 }
 0xe7c   : > { %v1564_v23 = vpop.permute.xlu0 %1563 }
 0xe7d   : > { %4102 = vpow2.f32 %v1555_v22  ;;  %3718 = vmatpush3.msra.mxu0 %v1564_v23 }
 0xe7e   : > { %3727 = vmatprep.subr.mxu0 %v4210_v13 }
 0xe80   : > { %v1713_v35 = vpop.permute.xlu0 %1712 }
 0xe84   : > { %v1879_v37 = vpop.permute.xlu0 %1878 }
 0xe87   : > { %v4103_v24 = vpop.eup %4102 }
 0xe88   : > { %v1557_v25 = vsel %vm361_vm2, %v4103_v24, 0.0 }
 0xe89   : > { %1558 = vadd.xlane.f32.xlu1 %v1557_v25 }
 0xe9a   : > { %1880 = vrot.lane.b32.xlu1 %v1312_v6, %s4215_s6 }
 0xebe   : > { %1463 = vmax.xlane.f32.xlu1 %v1462_v30 }
 0xf16   : > { %v1559_v32 = vpop.xlane.xlu1 %1558 }
 0xf17   : > { %4104 = vrcp.f32 %v1559_v32 }
 0xf1a   : > { %v1881_v36 = vpop.permute.xlu1 %1880 }
 0xf21   : > { %v4105_v33 = vpop.eup %4104 }
 0xf22   : > { %v1561_v34 = vmul.f32 %v4105_v33, %v4103_v24 }
 0xf24   : > { %3720 = vmatmul.mubr.msk.f32.vlgmr.msra.gmra.mrb[24].mxu0 %vm361_vm2, %v1561_v34  ;;  %v3349_v34 = vld [vmem:[%s4945_s1 + $0xa8] sm:$0xff] }
 0xf25   : > { %3728 = vmatpush3.xpose.msk.msra.mxu0 %vm361_vm2, %v1715_v31  ;;  %3729 = vmatprep.mubr.msk.f32.mxu0 %vm4209_vm1, %v4210_v13 }
 0xf26   : > { %3737 = vmatprep.subr.mxu0 %v4210_v13 }
 0xf28   : > { %3730 = vmatmul.mubr.msk.f32.vlgmr.msra.gmra.mrb[26].mxu0 %vm361_vm2, %v1713_v35  ;;  %v3351_v35 = vld [vmem:[%s4945_s1 + $0xb8] sm:$0xff] }
 0xf29   : > { %3738 = vmatpush3.xpose.msk.msra.mxu0 %vm361_vm2, %v1881_v36  ;;  %3739 = vmatprep.mubr.msk.f32.mxu0 %vm4209_vm1, %v4210_v13 }
 0xf2a   : > { %3955 = vmatprep.subr.bf16.mxu0 %v4208_v10 }
 0xf2c   : > { %3740 = vmatmul.mubr.msk.f32.vlgmr.msra.gmra.mrb[28].mxu0 %vm361_vm2, %v1879_v37  ;;  %v3352_v37 = vld [vmem:[%s4945_s1 + $0xc0] sm:$0xff] }
 0xf2d   : > { %3755 = vmatprep.mubr.msk.f32.mxu0 %vm4209_vm1, %v4210_v13 }
 0xf4b   : > { %v1464_v38 = vpop.xlane.xlu1 %1463 }
 0xf4c   : > { %v1465_v41 = vsub.f32 %v1458_v15, %v1464_v38  ;;  %v3959_v38 = vpack.c.bf16 %v3352_v37, %v3351_v35 }
 0xf4e   : > { %v1466_v42 = vmul.f32 1.442695, %v1465_v41  ;;  %v3354_v41 = vld [vmem:[%s4946_s2 + $0x80] sm:$0xff] }
 0xf50   : > { %4106 = vpow2.f32 %v1466_v42  ;;  %v3355_v42 = vld [vmem:[%s4946_s2 + $0x88] sm:$0xff] }
 0xf5a   : > { %v4107_v43 = vpop.eup %4106 }
 0xf5b   : > { %v1468_v44 = vsel %vm361_vm2, %v4107_v43, 0.0 }
 0xf5c   : > { %1469 = vadd.xlane.f32.xlu1 %v1468_v44  ;;  %v3962_v44 = vpack.c.bf16 %v3355_v42, %v3354_v41  ;;  %v3389_v41 = vld [vmem:[%s4945_s1 + $0xf0] sm:$0xff]  ;;  %v3390_v42 = vld [vmem:[%s4945_s1 + $0xf8] sm:$0xff] }
 0xfe9   : > { %v1470_v47 = vpop.xlane.xlu1 %1469 }
 0xfea   : > { %4108 = vrcp.f32 %v1470_v47  ;;  %v3357_v47 = vld [vmem:[%s4946_s2 + $0x98] sm:$0xff] }
 0xff4   : > { %v4109_v48 = vpop.eup %4108 }
 0xff5   : > { %v1472_v49 = vmul.f32 %v4109_v48, %v4107_v43  ;;  %v3356_v43 = vld [vmem:[%s4946_s2 + $0x90] sm:$0xff] }
 0xff6   : > { %v3965_v48 = vpack.c.bf16 %v3357_v47, %v3356_v43 }
 0xff7   : > { %v1635_v50 = vpop.f32.mrb[24].mxu0  ;;  %3725 = vmatmul.mubr.msk.f32.vlgmr.msra.gmra.mrb[8].mxu1 %vm361_vm2, %v1472_v49  ;;  %v3358_v49 = vld [vmem:[%s4946_s2 + $0xa0] sm:$0xff] }
 0xff8   : > { %v3721_v51 = vpop.f32.mrb[25].mxu0  ;;  %3734 = vmatprep.mubr.msk.f32.mxu1 %vm4209_vm1, %v4210_v13 }
 0xffb   : > { %v1786_v27 = vpop.f32.mrb[26].mxu0 }
 0xffc   : > { %v3731_v29 = vpop.f32.mrb[27].mxu0  ;;  %v1790_v46 = vsel %vm361_vm2, %v1786_v27, -inf }
 0xffd   : > { %1791 = vmax.xlane.f32.xlu0 %v1790_v46 }
 0xfff   : > { %v1952_v52 = vpop.f32.mrb[28].mxu0 }
0x1000   : > { %v3741_v53 = vpop.f32.mrb[29].mxu0  ;;  %v1956_v0 = vsel %vm361_vm2, %v1952_v52, -inf }
0x1001   : > { %1957 = vmax.xlane.f32.xlu0 %v1956_v0  ;;  %v3360_v0 = vld [vmem:[%s4946_s2 + $0xb0] sm:$0xff] }
0x108a   : > { %v1792_v54 = vpop.xlane.xlu0 %1791 }
0x108b   : > { %v1793_v55 = vsub.f32 %v1786_v27, %v1792_v54  ;;  %v3361_v54 = vld [vmem:[%s4946_s2 + $0xb8] sm:$0xff] }
0x108d   : > { %v1794_v56 = vmul.f32 1.442695, %v1793_v55  ;;  %v3971_v55 = vpack.c.bf16 %v3361_v54, %v3360_v0 }
0x108e   : > { %v1958_v57 = vpop.xlane.xlu0 %1957 }
0x108f   : > { %4110 = vpow2.f32 %v1794_v56  ;;  %v1959_v58 = vsub.f32 %v1952_v52, %v1958_v57  ;;  %v3362_v56 = vld [vmem:[%s4946_s2 + $0xc0] sm:$0xff]  ;;  %v3363_v57 = vld [vmem:[%s4946_s2 + $0xc8] sm:$0xff] }
0x1091   : > { %v1960_v59 = vmul.f32 1.442695, %v1959_v58  ;;  %v3974_v58 = vpack.c.bf16 %v3363_v57, %v3362_v56 }
0x1093   : > { %4112 = vpow2.f32 %v1960_v59  ;;  %v3364_v59 = vld [vmem:[%s4946_s2 + $0xd0] sm:$0xff] }
0x1099   : > { %v4111_v60 = vpop.eup %4110 }
0x109a   : > { %v1796_v61 = vsel %vm361_vm2, %v4111_v60, 0.0 }
0x109b   : > { %1797 = vadd.xlane.f32.xlu0 %v1796_v61 }
0x109d   : > { %v4113_v62 = vpop.eup %4112 }
0x109e   : > { %v1962_v63 = vsel %vm361_vm2, %v4113_v62, 0.0 }
0x109f   : > { %1963 = vadd.xlane.f32.xlu1 %v1962_v63  ;;  %v3367_v63 = vld [vmem:[%s4946_s2 + $0xe8] sm:$0xff] }
0x10b0   : > { %1967 = vrot.lane.b32.xlu1 %v4560_v8, %s4218_s9 }
0x10b1   : > { %1801 = vrot.lane.b32.xlu0 %v4560_v8, %s4219_s10 }
0x10ca   : > { %v1708_v1 = vpop.f32.mrb[8].mxu1 }
0x10cb   : > { %v1709_v2 = vadd.f32 %v1708_v1, %v1635_v50  ;;  %v3726_v4 = vpop.f32.mrb[9].mxu1  ;;  %v3359_v50 = vld [vmem:[%s4946_s2 + $0xa8] sm:$0xff] }
0x10cc   : > { %v3968_v51 = vpack.c.bf16 %v3359_v50, %v3358_v49  ;;  %v3369_v4 = vld [vmem:[%s4946_s2 + $0xf8] sm:$0xff]  ;;  %v3392_v49 = vld [vmem:[%s4945_s1 + $0x108] sm:$0xff] }
0x1128   : > { %v1798_v5 = vpop.xlane.xlu0 %1797 }
0x1129   : > { %4114 = vrcp.f32 %v1798_v5 }
0x112c   : > { %v1964_v6 = vpop.xlane.xlu1 %1963  ;;  %v1802_v7 = vpop.permute.xlu0 %1801 }
0x112d   : > { %4116 = vrcp.f32 %v1964_v6  ;;  %3733 = vmatpush3.msra.mxu1 %v1802_v7  ;;  %v2066_v6 = vrot.slane %v4553_v3, %v4498_v26 }
0x112e   : > { %3742 = vmatprep.subr.mxu1 %v4210_v13 }
0x1130   : > { %v1968_v12 = vpop.permute.xlu1 %1967 }
0x1133   : > { %v4115_v9 = vpop.eup %4114 }
0x1134   : > { %v1800_v11 = vmul.f32 %v4115_v9, %v4111_v60  ;;  %v3365_v60 = vld [vmem:[%s4946_s2 + $0xd8] sm:$0xff] }
0x1135   : > { %v3977_v61 = vpack.c.bf16 %v3365_v60, %v3364_v59 }
0x1136   : > { %3735 = vmatmul.mubr.msk.f32.vlgmr.msra.gmra.mrb[10].mxu1 %vm361_vm2, %v1800_v11 }
0x1137   : > { %v4117_v14 = vpop.eup %4116  ;;  %3743 = vmatpush3.msra.mxu1 %v1968_v12  ;;  %3744 = vmatprep.mubr.msk.f32.mxu1 %vm4209_vm1, %v4210_v13 }
0x1138   : > { %v1966_v8 = vmul.f32 %v4117_v14, %v4113_v62  ;;  %3961 = vmatprep.subr.bf16.mxu1 %v4208_v10  ;;  %v3366_v62 = vld [vmem:[%s4946_s2 + $0xe0] sm:$0xff] }
0x1139   : > { %v3980_v1 = vpack.c.bf16 %v3367_v63, %v3366_v62 }
0x113a   : > { %3745 = vmatmul.mubr.msk.f32.vlgmr.msra.gmra.mrb[12].mxu1 %vm361_vm2, %v1966_v8 }
0x113b   : > { %3790 = vmatprep.mubr.msk.f32.mxu1 %vm4209_vm1, %v4210_v13  ;;  %3963 = vmatpush3.bf16.msra.mxu1 %v3962_v44  ;;  %v3992_v44 = vpack.c.bf16 %v3390_v42, %v3389_v41 }
0x113c   : > { %3964 = vmatprep.subr.bf16.mxu1 %v4208_v10 }
0x113f   : > { %3966 = vmatpush3.bf16.msra.mxu1 %v3965_v48  ;;  %v3391_v48 = vld [vmem:[%s4945_s1 + $0x100] sm:$0xff] }
0x1140   : > { %3967 = vmatprep.subr.bf16.mxu1 %v4208_v10  ;;  %v3995_v50 = vpack.c.bf16 %v3392_v49, %v3391_v48 }
0x1143   : > { %3969 = vmatpush3.bf16.msra.mxu1 %v3968_v51  ;;  %v4749_v51 = vld [vmem:[%s4945_s1 + $0x130] sm:$0xff] }
0x1144   : > { %3970 = vmatprep.subr.bf16.mxu1 %v4208_v10 }
0x1147   : > { %3972 = vmatpush3.bf16.msra.mxu1 %v3971_v55 }
0x1148   : > { %3973 = vmatprep.subr.bf16.mxu1 %v4208_v10 }
0x114b   : > { %3975 = vmatpush3.bf16.msra.mxu1 %v3974_v58 }
0x114c   : > { %3976 = vmatprep.subr.bf16.mxu1 %v4208_v10 }
0x114f   : > { %3978 = vmatpush3.bf16.msra.mxu1 %v3977_v61 }
0x1150   : > { %3979 = vmatprep.subr.bf16.mxu1 %v4208_v10 }
0x1153   : > { %3981 = vmatpush3.bf16.msra.mxu1 %v3980_v1 }
0x1154   : > { %3982 = vmatprep.subr.bf16.mxu1 %v4208_v10 }
0x1209   : > { %v1873_v15 = vpop.f32.mrb[10].mxu1 }
0x120a   : > { %v1877_v16 = vadd.f32 %v1873_v15, %v1709_v2  ;;  %v3736_v17 = vpop.f32.mrb[11].mxu1  ;;  %v3368_v2 = vld [vmem:[%s4946_s2 + $0xf0] sm:$0xff] }
0x120b   : > { %v3983_v5 = vpack.c.bf16 %v3369_v4, %v3368_v2  ;;  %v2148_v17 = vrot.slane %v4553_v3, %v4505_v39  ;;  %v3385_v3 = vld [vmem:[%s4945_s1 + $0xd0] sm:$0xff] }
0x120d   : > { %v2039_v18 = vpop.f32.mrb[12].mxu1  ;;  %3984 = vmatpush3.bf16.msra.mxu1 %v3983_v5 }
0x120e   : > { %v2043_v19 = vadd.f32 %v2039_v18, %v1877_v16  ;;  %v3746_v21 = vpop.f32.mrb[13].mxu1  ;;  %3830 = vmatprep.subr.mxu1 %v4210_v13 }
0x1210   : > { %v2044_v22 = vadd.f32 %v2043_v19, %v4510_v45  ;;  %v3350_v45 = vld [vmem:[%s4945_s1 + $0xb0] sm:$0xff] }
0x1211   : > { %v3956_v36 = vpack.c.bf16 %v3350_v45, %v3349_v34  ;;  %v3388_v45 = vld [vmem:[%s4945_s1 + $0xe8] sm:$0xff] }
0x1212   : > { %v4620_v23 = vadd.f32 %v2048_v20, %v2044_v22 }
0x1213   : > { %3957 = vmatpush3.bf16.msra.mxu0 %v3956_v36 }
0x1214   : > { %v2050_v24 = vsel %vm196_vm0, %v4620_v23, 0.0  ;;  %3958 = vmatprep.subr.bf16.mxu0 %v4208_v10 }
0x1215   : > { %2051 = vadd.xlane.f32.xlu1 %v2050_v24 }
0x1217   : > { %3960 = vmatpush3.bf16.msra.mxu0 %v3959_v38 }
0x1218   : > { %3985 = vmatprep.subr.bf16.mxu0 %v4208_v10 }
0x12a2   : > { %v2052_v25 = vpop.xlane.xlu1 %2051 }
0x12a3   : > { %v2053_v30 = vmul.f32 0.03125, %v2052_v25 }
0x12a5   : > { %v2054_v31 = vsub.f32 %v4620_v23, %v2053_v30 }
0x12a7   : > { %v2055_v32 = vmul.f32 %v2054_v31, %v2054_v31 }
0x12a9   : > { %v2056_v33 = vsel %vm196_vm0, %v2055_v32, 0.0 }
0x12aa   : > { %2057 = vadd.xlane.f32.xlu0 %v2056_v33  ;;  %v3387_v33 = vld [vmem:[%s4945_s1 + $0xe0] sm:$0xff] }
0x12ab   : > { %v3989_v35 = vpack.c.bf16 %v3388_v45, %v3387_v33 }
0x1337   : > { %v2058_v27 = vpop.xlane.xlu0 %2057 }
0x1338   : > { %v2059_v29 = vmul.f32 0.03125, %v2058_v27  ;;  %v2267_v27 = vrot.slane %v4749_v51, %v4343_v28 }
0x133a   : > { %v2060_v46 = vadd.f32 1e-05, %v2059_v29 }
0x133c   : > { %4118 = vrsqrt.f32 %v2060_v46 }
0x1346   : > { %v4119_v52 = vpop.eup %4118 }
0x1347   : > { %v2062_v53 = vmul.f32 %v4119_v52, %v2054_v31 }
0x1349   : > { %3756 = vmatmul.mubr.msk.f32.vlgmr.msra.gmra.mrb[30].mxu0 %vm196_vm0, %v2062_v53 }
0x134a   : > { %3801 = vmatprep.mubr.msk.f32.mxu0 %vm4209_vm1, %v4210_v13 }
0x141c   : > { %v2136_v7 = vpop.f32.mrb[30].mxu0 }
0x141d   : > { %v2137_v9 = vadd.f32 %v2136_v7, %v2066_v6  ;;  %v3757_v11 = vpop.f32.mrb[31].mxu0 }
0x141f   : > { %v2141_v12 = vmul.f32 0.70710677, %v2137_v9  ;;  %v2140_v8 = vmul.f32 0.5, %v2137_v9 }
0x1421   : > { %4120 = verf.f32 %v2141_v12 }
0x142b   : > { %v4121_v14 = vpop.eup %4120 }
0x142c   : > { %v2143_v15 = vadd.f32 1.0, %v4121_v14 }
0x142e   : > { %v2144_v16 = vmul.f32 %v2143_v15, %v2140_v8 }
0x1430   : > { %3791 = vmatmul.mubr.f32.vlgmr.msra.gmra.mrb[14].mxu1 %v2144_v16 }
0x1431   : > { %3832 = vmatprep.mubr.msk.f32.mxu1 %vm4209_vm1, %v4210_v13 }
0x1503   : > { %v2215_v18 = vpop.f32.mrb[14].mxu1 }
0x1504   : > { %v2216_v19 = vadd.f32 %v2215_v18, %v2148_v17  ;;  %v3792_v20 = vpop.f32.mrb[15].mxu1 }
0x1506   : > { %v4706_v21 = vadd.f32 %v2216_v19, %v4620_v23  ;;  %v3386_v23 = vld [vmem:[%s4945_s1 + $0xd8] sm:$0xff] }
0x1507   : > { %v3986_v34 = vpack.c.bf16 %v3386_v23, %v3385_v3 }
0x1508   : > { %v2251_v22 = vsel %vm196_vm0, %v4706_v21, 0.0 }
0x1509   : > { %2252 = vadd.xlane.f32.xlu0 %v2251_v22  ;;  %3987 = vmatpush3.bf16.msra.mxu0 %v3986_v34 }
0x150a   : > { %3988 = vmatprep.subr.bf16.mxu0 %v4208_v10 }
0x150d   : > { %3990 = vmatpush3.bf16.msra.mxu0 %v3989_v35 }
0x150e   : > { %3991 = vmatprep.subr.bf16.mxu0 %v4208_v10 }
0x1596   : > { %v2253_v24 = vpop.xlane.xlu0 %2252 }
0x1597   : > { %v2254_v25 = vmul.f32 0.03125, %v2253_v24 }
0x1599   : > { %v2255_v30 = vsub.f32 %v4706_v21, %v2254_v25 }
0x159b   : > { %v2256_v31 = vmul.f32 %v2255_v30, %v2255_v30 }
0x159d   : > { %v2257_v32 = vsel %vm196_vm0, %v2256_v31, 0.0 }
0x159e   : > { %2258 = vadd.xlane.f32.xlu1 %v2257_v32 }
0x162b   : > { %v2259_v36 = vpop.xlane.xlu1 %2258 }
0x162c   : > { %v2260_v37 = vmul.f32 0.03125, %v2259_v36 }
0x162e   : > { %v2261_v38 = vadd.f32 1e-05, %v2260_v37 }
0x1630   : > { %4122 = vrsqrt.f32 %v2261_v38 }
0x163a   : > { %v4123_v43 = vpop.eup %4122 }
0x163b   : > { %v2263_v47 = vmul.f32 %v4123_v43, %v2255_v30 }
0x163d   : > { %3802 = vmatmul.mubr.msk.f32.vlgmr.msra.gmra.mrb[32].mxu0 %vm196_vm0, %v2263_v47 }
0x163e   : > { %3993 = vmatpush3.bf16.msra.mxu0 %v3992_v44  ;;  %3812 = vmatprep.mubr.msk.f32.mxu0 %vm4209_vm1, %v4210_v13 }
0x163f   : > { %3994 = vmatprep.subr.bf16.mxu0 %v4208_v10 }
0x1642   : > { %3996 = vmatpush3.bf16.msra.mxu0 %v3995_v50 }
0x1643   : > { %3815 = vmatprep.subr.mxu0 %v4210_v13 }
0x1645   : > { %3813 = vmatmul.mubr.msk.f32.vlgmr.msra.gmra.mrb[34].mxu0 %vm196_vm0, %v2263_v47 }
0x1646   : > { %3817 = vmatprep.mubr.msk.f32.mxu0 %vm4209_vm1, %v4210_v13 }
0x1710   : > { %v2337_v29 = vpop.f32.mrb[32].mxu0 }
0x1711   : > { %v2338_v46 = vadd.f32 %v2337_v29, %v2267_v27  ;;  %v3803_v52 = vpop.f32.mrb[33].mxu0 }
0x1713   : > { %2501 = vrot.lane.b32.xlu1 %v2338_v46, %s4213_s4  ;;  %2412 = vrot.lane.b32.xlu0 %v2338_v46, %s4212_s30 }
0x1717   : > { %2499 = vrot.lane.b32.xlu1 %v2338_v46, %s4211_s29 }
0x1718   : > { %v4756_v53 = vpop.f32.mrb[34].mxu0 }
0x1719   : > { %v3814_v0 = vpop.f32.mrb[35].mxu0  ;;  %3831 = vmatpush3.msra.mxu1 %v4756_v53 }
0x171a   : > { %3840 = vmatprep.subr.mxu1 %v4210_v13 }
0x171b   : > { %2740 = vrot.lane.b32.xlu1 %v2338_v46, %s4217_s8  ;;  %s3430_s8 = sshll.u32 %s4262_s16, 7 }
0x171c   : > { %s4901_s17 = scalar_lea.hbm %s4947_s3, %s3430_s8 }
0x1785   : > { %v2413_v54 = vpop.permute.xlu0 %2412  ;;  %v2502_v28 = vpop.permute.xlu1 %2501 }
0x1786   : > { %3816 = vmatpush3.xpose.msk.msra.mxu0 %vm361_vm2, %v2413_v54 }
0x1787   : > { %3820 = vmatprep.subr.mxu0 %v4210_v13 }
0x1789   : > { %3818 = vmatmul.mubr.msk.f32.vlgmr.msra.gmra.mrb[36].mxu0 %vm361_vm2, %v2338_v46  ;;  %v2500_v55 = vpop.permute.xlu1 %2499 }
0x178a   : > { %3821 = vmatpush3.xpose.msk.msra.mxu0 %vm361_vm2, %v2502_v28  ;;  %3822 = vmatprep.mubr.msk.f32.mxu0 %vm4209_vm1, %v4210_v13 }
0x178b   : > { %3825 = vmatprep.subr.mxu0 %v4210_v13 }
0x178d   : > { %3823 = vmatmul.mubr.msk.f32.vlgmr.msra.gmra.mrb[38].mxu0 %vm361_vm2, %v2500_v55  ;;  %v2741_v6 = vpop.permute.xlu1 %2740 }
0x178e   : > { %3827 = vmatprep.mubr.msk.f32.mxu0 %vm4209_vm1, %v4210_v13 }
0x185c   : > { %v2484_v56 = vpop.f32.mrb[36].mxu0 }
0x185d   : > { %v3819_v57 = vpop.f32.mrb[37].mxu0  ;;  %v2488_v5 = vsel %vm361_vm2, %v2484_v56, -inf }
0x1860   : > { %v2573_v58 = vpop.f32.mrb[38].mxu0 }
0x1861   : > { %v3824_v59 = vpop.f32.mrb[39].mxu0  ;;  %v2577_v60 = vsel %vm361_vm2, %v2573_v58, -inf }
0x1862   : > { %2578 = vmax.xlane.f32.xlu0 %v2577_v60  ;;  %v3074_v60 = vrot.slane %v4749_v51, %v4413_v40  ;;  %v3393_v40 = vld [vmem:[%s4945_s1 + $0x110] sm:$0xff] }
0x1878   : > { %2589 = vrot.lane.b32.xlu0 %v4756_v53, %s4212_s30 }
0x187c   : > { %2738 = vrot.lane.b32.xlu0 %v2338_v46, %s4214_s5 }
0x1880   : > { %2904 = vrot.lane.b32.xlu0 %v2338_v46, %s4216_s7 }
0x18ef   : > { %v2579_v61 = vpop.xlane.xlu0 %2578 }
0x18f0   : > { %v2580_v62 = vsub.f32 %v2573_v58, %v2579_v61 }
0x18f2   : > { %v2581_v63 = vmul.f32 1.442695, %v2580_v62 }
0x18f3   : > { %v2590_v1 = vpop.permute.xlu0 %2589 }
0x18f4   : > { %4124 = vpow2.f32 %v2581_v63  ;;  %3826 = vmatpush3.msra.mxu0 %v2590_v1 }
0x18f5   : > { %3835 = vmatprep.subr.mxu0 %v4210_v13 }
0x18f7   : > { %v2739_v12 = vpop.permute.xlu0 %2738 }
0x18fb   : > { %v2905_v8 = vpop.permute.xlu0 %2904 }
0x18fe   : > { %v4125_v2 = vpop.eup %4124 }
0x18ff   : > { %v2583_v4 = vsel %vm361_vm2, %v4125_v2, 0.0 }
0x1900   : > { %2584 = vadd.xlane.f32.xlu1 %v2583_v4 }
0x1911   : > { %2906 = vrot.lane.b32.xlu1 %v2338_v46, %s4215_s6  ;;  %s159_s6 = sand.u32 1, %s4198_s13  }
0x1912   : > { %s3324_s7 = sshll.u32 %s159_s6, 3  ;;  %s3248_s19 = scalar_lea.sflag [#allocation3], %s159_s6 }
0x1935   : > { %2489 = vmax.xlane.f32.xlu1 %v2488_v5 }
0x198d   : > { %v2585_v7 = vpop.xlane.xlu1 %2584 }
0x198e   : > { %4126 = vrcp.f32 %v2585_v7 }
0x1991   : > { %v2907_v14 = vpop.permute.xlu1 %2906 }
0x1998   : > { %v4127_v9 = vpop.eup %4126 }
0x1999   : > { %v2587_v11 = vmul.f32 %v4127_v9, %v4125_v2  ;;  %v3395_v9 = vld [vmem:[%s4945_s1 + $0x120] sm:$0xff] }
0x199b   : > { %3828 = vmatmul.mubr.msk.f32.vlgmr.msra.gmra.mrb[40].mxu0 %vm361_vm2, %v2587_v11  ;;  %v3396_v11 = vld [vmem:[%s4945_s1 + $0x128] sm:$0xff] }
0x199c   : > { %3836 = vmatpush3.xpose.msk.msra.mxu0 %vm361_vm2, %v2741_v6  ;;  %3837 = vmatprep.mubr.msk.f32.mxu0 %vm4209_vm1, %v4210_v13 }
0x199d   : > { %3845 = vmatprep.subr.mxu0 %v4210_v13 }
0x199f   : > { %3838 = vmatmul.mubr.msk.f32.vlgmr.msra.gmra.mrb[42].mxu0 %vm361_vm2, %v2739_v12  ;;  %v4001_v12 = vpack.c.bf16 %v3396_v11, %v3395_v9 }
0x19a0   : > { %3846 = vmatpush3.xpose.msk.msra.mxu0 %vm361_vm2, %v2907_v14  ;;  %3847 = vmatprep.mubr.msk.f32.mxu0 %vm4209_vm1, %v4210_v13  ;;  %v3398_v14 = vld [vmem:[%s4946_s2 + $0x100] sm:$0xff] }
0x19a1   : > { %3997 = vmatprep.subr.bf16.mxu0 %v4208_v10 }
0x19a3   : > { %3848 = vmatmul.mubr.msk.f32.vlgmr.msra.gmra.mrb[44].mxu0 %vm361_vm2, %v2905_v8  ;;  %v3399_v8 = vld [vmem:[%s4946_s2 + $0x108] sm:$0xff] }
0x19a4   : > { %3863 = vmatprep.mubr.msk.f32.mxu0 %vm4209_vm1, %v4210_v13 }
0x19c2   : > { %v2490_v15 = vpop.xlane.xlu1 %2489 }
0x19c3   : > { %v2491_v16 = vsub.f32 %v2484_v56, %v2490_v15  ;;  %v3400_v15 = vld [vmem:[%s4946_s2 + $0x110] sm:$0xff] }
0x19c5   : > { %v2492_v17 = vmul.f32 1.442695, %v2491_v16  ;;  %v4004_v16 = vpack.c.bf16 %v3399_v8, %v3398_v14 }
0x19c7   : > { %4128 = vpow2.f32 %v2492_v17  ;;  %v3401_v17 = vld [vmem:[%s4946_s2 + $0x118] sm:$0xff] }
0x19d1   : > { %v4129_v18 = vpop.eup %4128 }
0x19d2   : > { %v2494_v19 = vsel %vm361_vm2, %v4129_v18, 0.0 }
0x19d3   : > { %2495 = vadd.xlane.f32.xlu1 %v2494_v19  ;;  %v3402_v19 = vld [vmem:[%s4946_s2 + $0x120] sm:$0xff] }
0x1a60   : > { %v2496_v20 = vpop.xlane.xlu1 %2495 }
0x1a61   : > { %4130 = vrcp.f32 %v2496_v20  ;;  %v3403_v20 = vld [vmem:[%s4946_s2 + $0x128] sm:$0xff] }
0x1a6b   : > { %v4131_v22 = vpop.eup %4130 }
0x1a6c   : > { %v2498_v24 = vmul.f32 %v4131_v22, %v4129_v18  ;;  %v4007_v18 = vpack.c.bf16 %v3401_v17, %v3400_v15  ;;  %v4010_v22 = vpack.c.bf16 %v3403_v20, %v3402_v19 }
0x1a6e   : > { %v2661_v25 = vpop.f32.mrb[40].mxu0  ;;  %3833 = vmatmul.mubr.msk.f32.vlgmr.msra.gmra.mrb[16].mxu1 %vm361_vm2, %v2498_v24 }
0x1a6f   : > { %v3829_v30 = vpop.f32.mrb[41].mxu0  ;;  %3842 = vmatprep.mubr.msk.f32.mxu1 %vm4209_vm1, %v4210_v13 }
0x1a72   : > { %v2812_v31 = vpop.f32.mrb[42].mxu0 }
0x1a73   : > { %v3839_v32 = vpop.f32.mrb[43].mxu0  ;;  %v2816_v3 = vsel %vm361_vm2, %v2812_v31, -inf }
0x1a74   : > { %2817 = vmax.xlane.f32.xlu0 %v2816_v3  ;;  %v3404_v3 = vld [vmem:[%s4946_s2 + $0x130] sm:$0xff] }
0x1a76   : > { %v2978_v23 = vpop.f32.mrb[44].mxu0 }
0x1a77   : > { %v3849_v33 = vpop.f32.mrb[45].mxu0  ;;  %v2982_v34 = vsel %vm361_vm2, %v2978_v23, -inf }
0x1a78   : > { %2983 = vmax.xlane.f32.xlu0 %v2982_v34  ;;  %v3406_v34 = vld [vmem:[%s4946_s2 + $0x140] sm:$0xff] }
0x1b01   : > { %v2818_v45 = vpop.xlane.xlu0 %2817 }
0x1b02   : > { %v2819_v35 = vsub.f32 %v2812_v31, %v2818_v45  ;;  %v3407_v45 = vld [vmem:[%s4946_s2 + $0x148] sm:$0xff] }
0x1b04   : > { %v2820_v36 = vmul.f32 1.442695, %v2819_v35  ;;  %v4016_v35 = vpack.c.bf16 %v3407_v45, %v3406_v34 }
0x1b05   : > { %v2984_v37 = vpop.xlane.xlu0 %2983 }
0x1b06   : > { %4132 = vpow2.f32 %v2820_v36  ;;  %v2985_v38 = vsub.f32 %v2978_v23, %v2984_v37  ;;  %v3405_v23 = vld [vmem:[%s4946_s2 + $0x138] sm:$0xff]  ;;  %v3408_v36 = vld [vmem:[%s4946_s2 + $0x150] sm:$0xff] }
0x1b07   : > { %v4013_v33 = vpack.c.bf16 %v3405_v23, %v3404_v3  ;;  %v3409_v37 = vld [vmem:[%s4946_s2 + $0x158] sm:$0xff] }
0x1b08   : > { %v2986_v41 = vmul.f32 1.442695, %v2985_v38  ;;  %v4019_v38 = vpack.c.bf16 %v3409_v37, %v3408_v36 }
0x1b0a   : > { %4134 = vpow2.f32 %v2986_v41  ;;  %v3410_v41 = vld [vmem:[%s4946_s2 + $0x160] sm:$0xff] }
0x1b10   : > { %v4133_v42 = vpop.eup %4132 }
0x1b11   : > { %v2822_v43 = vsel %vm361_vm2, %v4133_v42, 0.0 }
0x1b12   : > { %2823 = vadd.xlane.f32.xlu0 %v2822_v43 }
0x1b14   : > { %v4135_v44 = vpop.eup %4134 }
0x1b15   : > { %v2988_v47 = vsel %vm361_vm2, %v4135_v44, 0.0 }
0x1b16   : > { %2989 = vadd.xlane.f32.xlu1 %v2988_v47  ;;  %v3413_v47 = vld [vmem:[%s4946_s2 + $0x178] sm:$0xff] }
0x1b27   : > { %2993 = vrot.lane.b32.xlu1 %v4756_v53, %s4218_s9  ;;  %s161_s9 = scalar_lea.vmem [#allocation2], %s3324_s7 }
0x1b28   : > { %2827 = vrot.lane.b32.xlu0 %v4756_v53, %s4219_s10  ;;  %s3261_s10 = sshll.u32 %s161_s9, 4  ;;  %s4903_s10 = int_to_ptr.vmem [resolvable:$true] %s3261_s10 }
0x1b29   : > { %s4144_s16 = scalar_lea.vmem %s4903_s10, 128  ;;  %p4151_p0 = scmp.lt.s32.totalorder %s4903_s10, %s4149_s24 }
0x1b2a   : > { %p4145_p11 = scmp.ne.s32.totalorder %s4903_s10, %s4144_s16  ;;  %p4152_p1 = scmp.lt.s32.totalorder %s4150_s25, %s4144_s16 }
0x1b2c   : > { %p4146_p12 = pnand %p4145_p11, %p4279_p5  ;;  %p4153_p2 = por %p4152_p1, %p4151_p0 }
0x1b2e   : > { %p4147_p13 = pneg %p4146_p12 }
0x1b30   : > { %p4154_p3 = pnand %p4153_p2, %p4147_p13 }
0x1b41   : > { %v2734_v48 = vpop.f32.mrb[16].mxu1 }
0x1b42   : > { %v2735_v49 = vadd.f32 %v2734_v48, %v2661_v25  ;;  %v3834_v50 = vpop.f32.mrb[17].mxu1 }
0x1b9f   : > { %v2824_v27 = vpop.xlane.xlu0 %2823 }
0x1ba0   : > { %4136 = vrcp.f32 %v2824_v27 }
0x1ba3   : > { %v2990_v29 = vpop.xlane.xlu1 %2989  ;;  %v2828_v46 = vpop.permute.xlu0 %2827 }
0x1ba4   : > { %4138 = vrcp.f32 %v2990_v29  ;;  %3841 = vmatpush3.msra.mxu1 %v2828_v46 }
0x1ba5   : > { %3850 = vmatprep.subr.mxu1 %v4210_v13 }
0x1ba7   : > { %v2994_v54 = vpop.permute.xlu1 %2993 }
0x1baa   : > { %v4137_v52 = vpop.eup %4136 }
0x1bab   : > { %v2826_v0 = vmul.f32 %v4137_v52, %v4133_v42  ;;  %v3411_v42 = vld [vmem:[%s4946_s2 + $0x168] sm:$0xff] }
0x1bac   : > { %v4022_v43 = vpack.c.bf16 %v3411_v42, %v3410_v41 }
0x1bad   : > { %3843 = vmatmul.mubr.msk.f32.vlgmr.msra.gmra.mrb[18].mxu1 %vm361_vm2, %v2826_v0 }
0x1bae   : > { %v4139_v28 = vpop.eup %4138  ;;  %3851 = vmatpush3.msra.mxu1 %v2994_v54  ;;  %3852 = vmatprep.mubr.msk.f32.mxu1 %vm4209_vm1, %v4210_v13 }
0x1baf   : > { %v2992_v53 = vmul.f32 %v4139_v28, %v4135_v44  ;;  %4003 = vmatprep.subr.bf16.mxu1 %v4208_v10  ;;  %v3412_v44 = vld [vmem:[%s4946_s2 + $0x170] sm:$0xff]  ;;  %v3174_v28 = vrot.slane %v4749_v51, %v4505_v39 }
0x1bb0   : > { %v4025_v48 = vpack.c.bf16 %v3413_v47, %v3412_v44 }
0x1bb1   : > { %3853 = vmatmul.mubr.msk.f32.vlgmr.msra.gmra.mrb[20].mxu1 %vm361_vm2, %v2992_v53 }
0x1bb2   : > { %3898 = vmatprep.mubr.msk.f32.mxu1 %vm4209_vm1, %v4210_v13  ;;  %4005 = vmatpush3.bf16.msra.mxu1 %v4004_v16 }
0x1bb3   : > { %4006 = vmatprep.subr.bf16.mxu1 %v4208_v10 }
0x1bb6   : > { %4008 = vmatpush3.bf16.msra.mxu1 %v4007_v18 }
0x1bb7   : > { %4009 = vmatprep.subr.bf16.mxu1 %v4208_v10 }
0x1bba   : > { %4011 = vmatpush3.bf16.msra.mxu1 %v4010_v22 }
0x1bbb   : > { %4012 = vmatprep.subr.bf16.mxu1 %v4208_v10 }
0x1bbe   : > { %4014 = vmatpush3.bf16.msra.mxu1 %v4013_v33 }
0x1bbf   : > { %4015 = vmatprep.subr.bf16.mxu1 %v4208_v10 }
0x1bc2   : > { %4017 = vmatpush3.bf16.msra.mxu1 %v4016_v35 }
0x1bc3   : > { %4018 = vmatprep.subr.bf16.mxu1 %v4208_v10 }
0x1bc6   : > { %4020 = vmatpush3.bf16.msra.mxu1 %v4019_v38 }
0x1bc7   : > { %4021 = vmatprep.subr.bf16.mxu1 %v4208_v10 }
0x1bca   : > { %4023 = vmatpush3.bf16.msra.mxu1 %v4022_v43 }
0x1bcb   : > { %4024 = vmatprep.subr.bf16.mxu1 %v4208_v10 }
0x1bce   : > { %4026 = vmatpush3.bf16.msra.mxu1 %v4025_v48 }
0x1c80   : > { %v2899_v55 = vpop.f32.mrb[18].mxu1 }
0x1c81   : > { %v2903_v56 = vadd.f32 %v2899_v55, %v2735_v49  ;;  %v3844_v57 = vpop.f32.mrb[19].mxu1  ;;  %v3092_v49 = vrot.slane %v4749_v51, %v4498_v26 }
0x1c84   : > { %v3065_v58 = vpop.f32.mrb[20].mxu1 }
0x1c85   : > { %v3069_v59 = vadd.f32 %v3065_v58, %v2903_v56  ;;  %v3854_v61 = vpop.f32.mrb[21].mxu1 }
0x1c87   : > { %v3070_v62 = vadd.f32 %v3069_v59, %v4706_v21  ;;  %v3394_v21 = vld [vmem:[%s4945_s1 + $0x118] sm:$0xff] }
0x1c88   : > { %v3998_v7 = vpack.c.bf16 %v3394_v21, %v3393_v40 }
0x1c89   : > { %v4816_v63 = vadd.f32 %v3074_v60, %v3070_v62 }
0x1c8a   : > { %3999 = vmatpush3.bf16.msra.mxu0 %v3998_v7 }
0x1c8b   : > { %v3076_v1 = vsel %vm196_vm0, %v4816_v63, 0.0  ;;  %4000 = vmatprep.subr.bf16.mxu0 %v4208_v10 }
0x1c8c   : > { %3077 = vadd.xlane.f32.xlu1 %v3076_v1 }
0x1c8e   : > { %4002 = vmatpush3.bf16.msra.mxu0 %v4001_v12 }
0x1d19   : > { %v3078_v2 = vpop.xlane.xlu1 %3077 }
0x1d1a   : > { %v3079_v4 = vmul.f32 0.03125, %v3078_v2 }
0x1d1c   : > { %v3080_v13 = vsub.f32 %v4816_v63, %v3079_v4 }
0x1d1e   : > { %v3081_v5 = vmul.f32 %v3080_v13, %v3080_v13 }
0x1d20   : > { %v3082_v6 = vsel %vm196_vm0, %v3081_v5, 0.0 }
0x1d21   : > { %3083 = vadd.xlane.f32.xlu0 %v3082_v6 }
0x1dae   : > { %v3084_v24 = vpop.xlane.xlu0 %3083 }
0x1daf   : > { %v3085_v25 = vmul.f32 0.03125, %v3084_v24 }
0x1db1   : > { %v3086_v30 = vadd.f32 1e-05, %v3085_v25 }
0x1db3   : > { %4140 = vrsqrt.f32 %v3086_v30 }
0x1dbd   : > { %v4141_v31 = vpop.eup %4140 }
0x1dbe   : > { %v3088_v32 = vmul.f32 %v4141_v31, %v3080_v13 }
0x1dc0   : > { %3864 = vmatmul.mubr.msk.f32.vlgmr.msra.gmra.mrb[46].mxu0 %vm196_vm0, %v3088_v32 }
0x1e93   : > { %v3162_v50 = vpop.f32.mrb[46].mxu0 }
0x1e94   : > { %v3163_v27 = vadd.f32 %v3162_v50, %v3092_v49  ;;  %v3865_v29 = vpop.f32.mrb[47].mxu0 }
0x1e96   : > { %v3167_v46 = vmul.f32 0.70710677, %v3163_v27  ;;  %v3166_v52 = vmul.f32 0.5, %v3163_v27 }
0x1e98   : > { %4142 = verf.f32 %v3167_v46 }
0x1ea2   : > { %v4143_v10 = vpop.eup %4142 }
0x1ea3   : > { %v3169_v0 = vadd.f32 1.0, %v4143_v10 }
0x1ea5   : > { %v3170_v54 = vmul.f32 %v3169_v0, %v3166_v52 }
0x1ea7   : > { %3899 = vmatmul.mubr.f32.vlgmr.msra.gmra.mrb[22].mxu1 %v3170_v54 }
0x1f7a   : > { %v3241_v53 = vpop.f32.mrb[22].mxu1 }
0x1f7b   : > { %v3242_v26 = vadd.f32 %v3241_v53, %v3174_v28  ;;  %v3900_v55 = vpop.f32.mrb[23].mxu1 }
0x1f7d   : > { %v3245_v56 = vadd.f32 %v3242_v26, %v4816_v63 }
0x1f7f   : > { %3246 = vst.msk [vmem:[%s161_s9] sm:$0xff] %vm196_vm0, %v3245_v56 }
0x1f80   : > { %4157 = shalt.err (!%p4154_p3)
}
0x1f81   : > { %s4158_s26 = scalar_lea.hbm %s4901_s17, 128  ;;  %s4162_s30 = scalar_lea.hbm %s4947_s3, 256 }
0x1f82   : > { %p4159_p4 = scmp.ne.s32.totalorder %s4901_s17, %s4158_s26  ;;  %p4163_p9 = scmp.lt.u32.totalorder %s4901_s17, %s4947_s3 }
0x1f83   : > { %p4164_p10 = scmp.lt.u32.totalorder %s4162_s30, %s4158_s26  ;;  %p4166_p12 = scmp.lt.u32.totalorder %s4158_s26, %s4901_s17 }
0x1f84   : > { %p4160_p7 = pnand %p4159_p4, %p4279_p5 }
0x1f85   : > { %p4165_p11 = por %p4164_p10, %p4163_p9 }
0x1f86   : > { %p4161_p8 = pneg %p4160_p7 }
0x1f87   : > { %p4167_p13 = por %p4166_p12, %p4165_p11 }
0x1f89   : > { %p4168_p0 = pnand %p4167_p13, %p4161_p8 }
0x1f8b   : > { %4171 = shalt.err (!%p4168_p0)
}
0x1f8c   : > { %4027 = dma.vmem_to_hbm [thread:$0]  (%p4279_p5), %s4903_s10, 128, %s4901_s17, %s3248_s19  }
0x1f8d PF: > { %p4033_p1 = scmp.ge.s32.totalorder %s4206_s15, 2  ;;  %s3273_s6 = sand.u32 1, %s4194_s12  }
0x1f8e   : > { %s3274_s7 = scalar_lea.sflag [#allocation3], %s3273_s6 }
0x1f8f   : > { %p4030_p2 = pnand %p4033_p1, %p4283_p6 }
0x1f91   : > { %4189 = dma.done.wait (!%p4030_p2), %s3274_s7, 128  }
0x1f92   : > { %4191 = vsyncadd (!%p4030_p2), %s3274_s7, 4294967168  ;;  %p13_p3 = scmp.ge.s32.totalorder %s4266_s18, 4   ;;  %s4950_s12 = smov %s4198_s13 }
0x1f93   : > { %s4951_s13 = smov %s4202_s14  ;;  %s4952_s14 = smov %s4277_s21 }
0x1f94   : > { %s4953_s15 = smov %s4266_s18  ;;  %15 = sbr.rel (!%p13_p3) target bundleno = 3 (0x3), region = 71 }
0x1f9b   :  { %3279 = vsyncpa [#allocation3], 1 }
0x1f9c   :  { %3281 = vsyncpa [#allocation3 + $0x1], 1 }

</bundles_post_ra>
